<compile_context>
chip_gen: v7x
topology: tpu7x:2x2x1
jax: 0.10.0
libtpu: 0.0.40
codegen_flags: <defaults>
</compile_context>

<pallas_src>
import functools
import math

import jax
import jax.numpy as jnp
from jax.experimental import pallas as pl
from jax.experimental.pallas import tpu as pltpu


_LANE = 1024                              # lane-dense last dim of the flattened slab (multiple of 128)
_TARGET_BLOCK_BYTES = 8 * 1024 * 1024     # ~8 MiB per block, dtype-agnostic (bytes-based sizing)
_VMEM_LIMIT_BYTES = 48 * 1024 * 1024      # explicit scoped-VMEM limit: 4 x 8 MiB buffers + headroom
_MIN_GRID_STEPS = 4                       # keep >=4 grid steps so "parallel" shards across 2 TCs (v7x)
_SMALL_BYPASS_ELEMS = 64 * 1024           # below this, fused XLA elementwise beats a kernel launch
_MAX_NATURAL_BLOCK_BYTES = 16 * 1024 * 1024  # guard for the natural-layout path (8 rows must fit)

_TRANSCENDENTAL_ACTS = ("tanh", "sigmoid", "swish", "gelu", "gelu_new")


def _apply_activation(x, act_type):
    """Element-wise activation matching PyTorch semantics."""
    if act_type == "relu":
        return jnp.maximum(x, 0.0)
    elif act_type == "tanh":
        return jnp.tanh(x)
    elif act_type == "sigmoid":
        return jax.nn.sigmoid(x)
    elif act_type == "swish":          # x * sigmoid(x)  (a.k.a. silu)
        return x * jax.nn.sigmoid(x)
    elif act_type == "gelu":           # exact erf-based gelu (torch default)
        return 0.5 * x * (1.0 + jax.lax.erf(x * (1.0 / math.sqrt(2.0))))
    elif act_type == "gelu_new":       # tanh approximation (HF "gelu_new")
        c = math.sqrt(2.0 / math.pi)
        return 0.5 * x * (1.0 + jnp.tanh(c * (x + 0.044715 * x * x * x)))
    elif act_type == "leakyrelu":
        return jnp.where(x >= 0.0, x, 0.01 * x)
    else:
        raise ValueError(f"unsupported activation_type: {act_type}")


def _activation_kernel(x_ref, o_ref, *, act_type, compute_dtype):
    x = x_ref[...].astype(compute_dtype)
    o_ref[...] = _apply_activation(x, act_type).astype(o_ref.dtype)


@functools.lru_cache(maxsize=1)
def _vmem_limit_bytes():
    """Generation-aware scoped-VMEM limit: 48 MiB, capped at 75% of capacity."""
    limit = _VMEM_LIMIT_BYTES
    try:
        cap = getattr(pltpu.get_tpu_info(), "vmem_capacity_bytes", None)
        if cap:
            limit = min(limit, (int(cap) * 3) // 4)   # v7x: 64 MiB physical -> 48 MiB
    except Exception:
        pass
    return limit


def _pick_block_rows(rows, lane, itemsize):
    """Multiple-of-8 row tile targeting ~_TARGET_BLOCK_BYTES, with >=4 grid steps."""
    br = max(8, (_TARGET_BLOCK_BYTES // (lane * itemsize)) // 8 * 8)
    if rows >= 8 * _MIN_GRID_STEPS:
        # Ensure at least _MIN_GRID_STEPS grid steps so the parallel grid axis
        # can be sharded across both TensorCores on v7x megacore.
        cap = max(8, (rows // _MIN_GRID_STEPS) // 8 * 8)
        br = min(br, cap)
    return min(br, rows)


def _compute_dtype_for(act_type, dtype):
    # Exact erf-gelu keeps an f32 compute path for precision; everything else
    # runs in the input's native dtype (bf16 math -> bf16 VPU/EUP on v6e/v7x).
    return jnp.float32 if act_type == "gelu" else dtype


def _run_2d(x2d, act_type):
    rows, lane = x2d.shape
    itemsize = x2d.dtype.itemsize
    block_rows = _pick_block_rows(rows, lane, itemsize)
    grid = (pl.cdiv(rows, block_rows),)

    compute_dtype = _compute_dtype_for(act_type, x2d.dtype)
    kernel = functools.partial(
        _activation_kernel, act_type=act_type, compute_dtype=compute_dtype)

    n = rows * lane
    cost = pl.CostEstimate(
        flops=8 * n,
        transcendentals=n if act_type in _TRANSCENDENTAL_ACTS else 0,
        bytes_accessed=2 * n * itemsize)

    return pl.pallas_call(
        kernel,
        out_shape=jax.ShapeDtypeStruct((rows, lane), x2d.dtype),
        grid=grid,
        in_specs=[pl.BlockSpec((block_rows, lane), lambda i: (i, 0))],
        out_specs=pl.BlockSpec((block_rows, lane), lambda i: (i, 0)),
        compiler_params=pltpu.CompilerParams(
            dimension_semantics=("parallel",),
            vmem_limit_bytes=_vmem_limit_bytes()),
        cost_estimate=cost,
    )(x2d)


class Activations:
    """JAX/Pallas equivalent of the PyTorch Activations module (forward = f(x))."""

    def __init__(self, activation_type: str = "gelu_new"):
        self.activation_type = activation_type

    def __call__(self, x):
        act = self.activation_type
        orig_shape = x.shape
        total = x.size
        if total == 0:
            return x

        compute_dtype = _compute_dtype_for(act, x.dtype)

        # Tiny adapter-sized inputs: fused XLA elementwise is strictly faster
        # than kernel launch + reshape + pipeline ramp-up.
        if total < _SMALL_BYPASS_ELEMS:
            return _apply_activation(x.astype(compute_dtype), act).astype(x.dtype)

        if total % _LANE == 0:
            # Free reshape to a lane-dense slab: full-width vst, no masking.
            out = _run_2d(x.reshape(-1, _LANE), act)
            return out.reshape(orig_shape)

        feats = orig_shape[-1]
        if x.ndim >= 2 and feats * 8 * x.dtype.itemsize <= _MAX_NATURAL_BLOCK_BYTES:
            # Keep the natural (rows, feats) layout; a block dim equal to the
            # full array dim is allowed even when feats % 128 != 0.  One masked
            # store group per row is far cheaper than pad + slice (3x HBM traffic).
            out = _run_2d(x.reshape(-1, feats), act)
            return out.reshape(orig_shape)

        # Rare fallback (rank-1 / enormous unaligned feature dim): a single
        # fused XLA elementwise op is already one HBM read + one write.
        return _apply_activation(x.astype(compute_dtype), act).astype(x.dtype)


def _reference(x, act_type):
    return _apply_activation(x.astype(jnp.float32), act_type).astype(x.dtype)


if __name__ == "__main__":
    key = jax.random.PRNGKey(0)
    ok = True

    # Small adapter-style activation input: (batch=2, seq=8, hidden=32).
    # (Hits the small-tensor bypass — fused XLA path.)
    x_small = jax.random.normal(key, (2, 8, 32), dtype=jnp.float32)
    for act in ["relu", "tanh", "sigmoid", "swish", "gelu", "gelu_new", "leakyrelu"]:
        y = Activations(act)(x_small)
        jax.block_until_ready(y)
        if not jnp.allclose(y, _reference(x_small, act), atol=1e-5, rtol=1e-5):
            ok = False
            print(f"MISMATCH for activation {act} (f32 small)")

    # Medium unaligned shape: exercises the natural-layout kernel path
    # (feats=1000 not a multiple of 128, no pad/slice traffic).
    x_med = jax.random.normal(jax.random.fold_in(key, 1), (2, 300, 1000),
                              dtype=jnp.float32)
    y = Activations("gelu_new")(x_med)
    jax.block_until_ready(y)
    if not jnp.allclose(y, _reference(x_med, "gelu_new"), atol=1e-5, rtol=1e-5):
        ok = False
        print("MISMATCH for gelu_new (f32 medium, natural layout)")

    # Lane-aligned f32 path: multiple grid tiles in the lane-dense slab.
    x_big = jax.random.normal(jax.random.fold_in(key, 3), (8, 512, 256),
                              dtype=jnp.float32)
    y = Activations("gelu")(x_big)
    jax.block_until_ready(y)
    if not jnp.allclose(y, _reference(x_big, "gelu"), atol=1e-5, rtol=1e-5):
        ok = False
        print("MISMATCH for gelu (f32 lane-aligned)")

    # bf16 path (native bf16 compute inside the kernel, lane-dense slab).
    x_bf16 = jax.random.normal(jax.random.fold_in(key, 2), (4, 128, 256),
                               dtype=jnp.bfloat16)
    y = Activations("swish")(x_bf16)
    jax.block_until_ready(y)
    y_ref = _reference(x_bf16, "swish")
    if not jnp.allclose(y.astype(jnp.float32), y_ref.astype(jnp.float32),
                        atol=5e-2, rtol=5e-2):
        ok = False
        print("MISMATCH for swish (bf16)")

    if ok:
        print("KERNEL_OK")
</pallas_src>

<mosaic_0001>
module attributes {stable_mosaic.version = 11 : i64} {
  func.func @_activation_kernel(%arg0: i32, %arg1: memref<144x1000xf32, #tpu.memory_space<vmem>>, %arg2: memref<144x1000xf32, #tpu.memory_space<vmem>>) attributes {dimension_semantics = [#tpu.dimension_semantics<parallel>], iteration_bounds = array<i64: 5>, scalar_prefetch = 0 : i64, scratch_operands = 0 : i64, tpu.core_type = #tpu.core_type<tc>, window_params = [{transform_indices = @transform_0, window_bounds = array<i64: 144, 1000>}, {transform_indices = @transform_1, window_bounds = array<i64: 144, 1000>}]} {
    %c0 = arith.constant 0 : index
    %c0_0 = arith.constant 0 : index
    %0 = vector.load %arg1[%c0, %c0_0] : memref<144x1000xf32, #tpu.memory_space<vmem>>, vector<144x1000xf32>
    %cst = arith.constant 5.000000e-01 : f32
    %1 = vector.broadcast %cst : f32 to vector<144x1000xf32>
    %2 = arith.mulf %1, %0 : vector<144x1000xf32>
    %cst_1 = arith.constant 4.471500e-02 : f32
    %3 = vector.broadcast %cst_1 : f32 to vector<144x1000xf32>
    %4 = arith.mulf %3, %0 : vector<144x1000xf32>
    %5 = arith.mulf %4, %0 : vector<144x1000xf32>
    %6 = arith.mulf %5, %0 : vector<144x1000xf32>
    %7 = arith.addf %0, %6 : vector<144x1000xf32>
    %cst_2 = arith.constant 0.797884583 : f32
    %8 = vector.broadcast %cst_2 : f32 to vector<144x1000xf32>
    %9 = arith.mulf %8, %7 : vector<144x1000xf32>
    %10 = math.tanh %9 : vector<144x1000xf32>
    %cst_3 = arith.constant 1.000000e+00 : f32
    %11 = vector.broadcast %cst_3 : f32 to vector<144x1000xf32>
    %12 = arith.addf %11, %10 : vector<144x1000xf32>
    %13 = arith.mulf %2, %12 : vector<144x1000xf32>
    %c0_4 = arith.constant 0 : index
    %c0_5 = arith.constant 0 : index
    %14 = vector.load %arg2[%c0_4, %c0_5] : memref<144x1000xf32, #tpu.memory_space<vmem>>, vector<144x1000xf32>
    tpu.vector_store %arg2[%c0_4, %c0_5], %13 {strides = array<i32>} : memref<144x1000xf32, #tpu.memory_space<vmem>>, vector<144x1000xf32>,
    return
  }
  func.func @transform_0(%arg0: i32) -> (i32, i32) {
    %c0_i32 = arith.constant 0 : i32
    %c0_i32_0 = arith.constant 0 : i32
    return %arg0, %c0_i32 : i32, i32
  }
  func.func @transform_1(%arg0: i32) -> (i32, i32) {
    %c0_i32 = arith.constant 0 : i32
    %c0_i32_0 = arith.constant 0 : i32
    return %arg0, %c0_i32 : i32, i32
  }
}

</mosaic_0001>

<bundles_post_ra>
// kernel: tpu_custom_call.1
= control target key start
LH: loop header
LB: loop body
LE: loop exit
PB: predicated region body
PF: predicated region fallthrough
CT: control target
= control target key end

     0   :  { %6 = vsyncpa [#allocation3], 0  ;;  %s3777_s0 = inlined_call_operand.hbm [shape: f32[600,1000], index: 0, kind: input, shape index: {}]   ;;  %s3778_s1 = inlined_call_operand.hbm [shape: f32[600,1000], index: 1, kind: output, shape index: {}]  }
   0x1   :  { %8 = vsyncpa [#allocation3 + $0x1], 0 }
   0x2   :  { %9 = vsyncpa [#allocation4], 0 }
   0x3   :  { %11 = vsyncpa [#allocation4 + $0x1], 0  ;;  %s2308_s6 = smov 0   ;;  %s2310_s7 = smov 0  }
   0x4   :  { %s2312_s8 = smov 0   ;;  %s2314_s9 = smov 0  }
   0x5 LB: > { %s2329_s10 = sadd.s32 4294967295, %s2290_s9   ;;  %s1835_s11 = sadd.s32 4294967294, %s2290_s9   ;;  %s2290_s9 = sphi %s2314_s9, %s3786_s9   ;;  %s2286_s8 = sphi %s2312_s8, %s3785_s8   ;;  %s2282_s7 = sphi %s2310_s7, %s3784_s7   ;;  %s2278_s6 = sphi %s2308_s6, %s3783_s6  }
   0x6   : > { %s2333_s12 = sadd.s32 1, %s2290_s9   ;;  %s24_s13 = sadd.s32 1, %s2286_s8 }
   0x7   : > { %s21_s14 = ssub.s32 %s2290_s9, %s2333_s12  ;;  %p31_p0 = scmp.ne.s32.totalorder %s2286_s8, %s2282_s7 }
   0x8   : > { %p22_p1 = scmp.eq.s32.totalorder %s21_s14, 0  ;;  %p32_p2 = scmp.eq.s32.totalorder %s2290_s9, 0 }
   0x9   : > { %p37_p3 = scmp.ne.s32.totalorder %s2282_s7, %s2278_s6  ;;  %p38_p4 = scmp.eq.s32.totalorder %s2329_s10, 0 }
   0xa   : > { %s2345_s15 = scalar_select %p22_p1, %s2286_s8, %s24_s13  }
   0xb   : > { %p33_p5 = por %p32_p2, %p31_p0  ;;  %p2347_p6 = por %p38_p4, %p37_p3 }
   0xc   : > { %p61_p7 = scmp.eq.s32.totalorder %s2329_s10, 4  ;;  %p67_p8 = scmp.eq.s32.totalorder %s1835_s11, 4 }
   0xd   : > { %p1837_p11 = scmp.ge.s32.totalorder %s2290_s9, 5 }
   0xe   : > { %p2352_p9 = por %p61_p7, %p31_p0  ;;  %p2356_p10 = por %p67_p8, %p37_p3 }
   0xf   : > { %83 = sbr.rel (%p1837_p11) target bundleno = 57 (0x39), region = 16 }
  0x10   : > { %s3781_s18 = scalar_select %p2356_p10, 1, 0 }
  0x16   : > { %86 = sbr.rel (!%p33_p5) target bundleno = 57 (0x39), region = 20  ;;  %s87_s19 = sand.u32 (%p33_p5), 1, %s2286_s8  }
  0x17   : > { %s92_s20 = smul.u32 (%p33_p5), 18, %s2290_s9  ;;  %s2366_s25 = scalar_lea.sflag (%p33_p5), [#allocation3], %s87_s19 }
  0x18   : > { %s1863_s21 = smul.u32 (%p33_p5), 1152, %s87_s19 }
  0x19   : > { %s93_s22 = ssub.s32 (%p33_p5), 75, %s92_s20 }
  0x1a   : > { %p94_p12 = scmp.lt.s32.totalorder (%p33_p5), %s93_s22, 18  ;;  %s91_s26 = scalar_lea.vmem (%p33_p5), [#allocation2], %s1863_s21 }
  0x1d   : > { %s3788_s22 = smov (!%p94_p12, %s93_s22), 18 }
  0x1e   : > { %s2363_s23 = sshll.u32 %s3788_s22, 10 }
  0x1f   : > { %s99_s24 = ssub.s32 18432, %s2363_s23 }
  0x20   : > { %100 = vsyncadd %s2366_s25, %s99_s24  ;;  %p1840_p13 = scmp.ne.s32.totalorder %s2363_s23, 0  ;;  %s1861_s27 = smul.u32 18432, %s2290_s9 }
  0x21   : > { %s106_s28 = sshll.u32 %s91_s26, 4  ;;  %s2200_s11 = scalar_lea.hbm %s3777_s0, 76800  ;;  %s2376_s28 = int_to_ptr.vmem [resolvable:$true] %s106_s28 }
  0x22   : > { %s2374_s2 = scalar_lea.hbm %s3777_s0, %s1861_s27 }
  0x23   : > { %s2196_s3 = scalar_lea.hbm %s2374_s2, %s2363_s23  ;;  %p2201_p3 = scmp.lt.u32.totalorder %s2374_s2, %s3777_s0 }
  0x24   : > { %p2197_p0 = scmp.ne.s32.totalorder %s2374_s2, %s2196_s3  ;;  %p2202_p4 = scmp.lt.u32.totalorder %s2200_s11, %s2196_s3 }
  0x25   : > { %p2204_p7 = scmp.lt.u32.totalorder %s2196_s3, %s2374_s2 }
  0x26   : > { %p2198_p1 = pnand %p2197_p0, %p1840_p13  ;;  %p2203_p5 = por %p2202_p4, %p2201_p3 }
  0x28   : > { %p2199_p2 = pneg %p2198_p1  ;;  %p2205_p8 = por %p2204_p7, %p2203_p5 }
  0x2a   : > { %p2206_p11 = pnand %p2205_p8, %p2199_p2 }
  0x2c   : > { %2209 = shalt.err (!%p2206_p11)
}
  0x2d   : > { %s2210_s19 = scalar_lea.vmem %s2376_s28, %s2363_s23  ;;  %s2292_s20 = smov [#allocation2]  }
  0x2e   : > { %p2211_p12 = scmp.ne.s32.totalorder %s2376_s28, %s2210_s19  ;;  %s2214_s21 = sshll.u32 %s2292_s20, 4  ;;  %s2215_s21 = int_to_ptr.vmem [resolvable:$false] %s2214_s21 }
  0x2f   : > { %s2216_s22 = scalar_lea.vmem %s2215_s21, 36864  ;;  %p2217_p10 = scmp.lt.s32.totalorder %s2376_s28, %s2215_s21 }
  0x30   : > { %p2212_p0 = pnand %p2211_p12, %p1840_p13  ;;  %p2218_p3 = scmp.lt.s32.totalorder %s2216_s22, %s2210_s19 }
  0x32   : > { %p2213_p1 = pneg %p2212_p0  ;;  %p2219_p4 = por %p2218_p3, %p2217_p10 }
  0x34   : > { %p2220_p5 = pnand %p2219_p4, %p2213_p1 }
  0x36   : > { %2223 = shalt.err (!%p2220_p5)
}
  0x37   : > { %s2293_s24 = smov 1024   ;;  %s2294_s26 = smov 64  }
  0x38   : > { %112 = dma.hbm_to_vmem [thread:$0]  (%p1840_p13), %s2374_s2, %s2363_s23, %s2376_s28, %s2366_s25, %s2293_s24, %s2293_s24, %s2294_s26  }
  0x39 PF: > { %p1845_p2 = scmp.ge.s32.totalorder %s2290_s9, 1  ;;  %p114_p7 = scmp.lt.s32.totalorder %s2290_s9, 6 }
  0x3b   : > { %p115_p8 = pnand %p1845_p2, %p114_p7 }
  0x3c   : > { %s2406_s27 = sand.u32 (!%p115_p8), 1, %s2282_s7  }
  0x3d   : > { %118 = sbr.rel (%p115_p8) target bundleno = 437 (0x1b5), region = 24  ;;  %s121_s30 = scalar_lea.sflag (!%p115_p8), [#allocation3], %s2406_s27 }
  0x3e   : > { %s1864_s29 = smul.u32 (!%p115_p8), 1152, %s2406_s27 }
  0x40   : > { %s2412_s3 = scalar_lea.vmem (!%p115_p8), [#allocation2], %s1864_s29 }
  0x44   : > { %2269 = dma.done.wait (%p2347_p6), %s121_s30, 18432  }
  0x45   : > { %2271 = vsyncadd (%p2347_p6), %s121_s30, 4294948864  ;;  %v155_v0 = vld [vmem:[%s2412_s3] sm:$0xff]  ;;  %v156_v1 = vld [vmem:[%s2412_s3 + $0x8] sm:$0xff]  ;;  %vm1602_vm0 = vcmask 850944   ;;  %s2501_s16 = scalar_lea.vmem [#allocation5], %s1864_s29  ;;  %s1741_s23 = scalar_lea.sflag [#allocation4], %s2406_s27 }
  0x46   : > { %v157_v2 = vld [vmem:[%s2412_s3 + $0x10] sm:$0xff]  ;;  %v443_v3 = vmul.f32 0.044715, %v155_v0  ;;  %v444_v4 = vmul.f32 0.044715, %v156_v1  ;;  %v158_v6 = vld [vmem:[%s2412_s3 + $0x18] sm:$0xff] }
  0x47   : > { %v445_v5 = vmul.f32 0.044715, %v157_v2  ;;  %v159_v7 = vld [vmem:[%s2412_s3 + $0x20] sm:$0xff]  ;;  %v2424_v8 = vld [vmem:[%s2412_s3 + $0x28] sm:$0xff]  ;;  %v446_v11 = vmul.f32 0.044715, %v158_v6 }
  0x48   : > { %v587_v9 = vmul.f32 %v443_v3, %v155_v0  ;;  %v588_v10 = vmul.f32 %v444_v4, %v156_v1  ;;  %v2427_v12 = vld [vmem:[%s2412_s3 + $0x30] sm:$0xff]  ;;  %v447_v14 = vmul.f32 0.044715, %v159_v7  ;;  %v448_v18 = vmul.f32 0.044715, %v2424_v8  ;;  %v162_v26 = vld [vmem:[%s2412_s3 + $0x38] sm:$0xff] }
  0x49   : > { %v589_v13 = vmul.f32 %v445_v5, %v157_v2  ;;  %v590_v17 = vmul.f32 %v446_v11, %v158_v6  ;;  %v449_v21 = vmul.f32 0.044715, %v2427_v12  ;;  %v2433_v27 = vmul.f32 0.5, %v155_v0  ;;  %v2439_v39 = vld [vmem:[%s2412_s3 + $0x40] sm:$0xff]  ;;  %v2445_v43 = vld [vmem:[%s2412_s3 + $0x48] sm:$0xff]  ;;  %v2449_v47 = vld [vmem:[%s2412_s3 + $0x50] sm:$0xff] }
  0x4a   : > { %v731_v15 = vmul.f32 %v587_v9, %v155_v0  ;;  %v732_v16 = vmul.f32 %v588_v10, %v156_v1  ;;  %v591_v20 = vmul.f32 %v447_v14, %v159_v7  ;;  %v592_v25 = vmul.f32 %v448_v18, %v2424_v8  ;;  %v2456_v54 = vld [vmem:[%s2412_s3 + $0x58] sm:$0xff]  ;;  %v2463_v58 = vld [vmem:[%s2412_s3 + $0x60] sm:$0xff]  ;;  %s1748_s25 = smul.u32 (%p2352_p9), 18, %s2329_s10 }
  0x4b   : > { %v733_v19 = vmul.f32 %v589_v13, %v157_v2  ;;  %v734_v24 = vmul.f32 %v590_v17, %v158_v6  ;;  %v593_v30 = vmul.f32 %v449_v21, %v2427_v12  ;;  %v450_v38 = vmul.f32 0.044715, %v162_v26 }
  0x4c   : > { %v875_v22 = vadd.f32 %v731_v15, %v155_v0  ;;  %v876_v23 = vadd.f32 %v732_v16, %v156_v1  ;;  %v735_v29 = vmul.f32 %v591_v20, %v159_v7  ;;  %v736_v34 = vmul.f32 %v592_v25, %v2424_v8  ;;  %s1749_s28 = ssub.s32 (%p2352_p9), 75, %s1748_s25 }
  0x4d   : > { %v877_v28 = vadd.f32 %v733_v19, %v157_v2  ;;  %v878_v33 = vadd.f32 %v734_v24, %v158_v6  ;;  %v737_v37 = vmul.f32 %v593_v30, %v2427_v12  ;;  %v2441_v40 = vmul.f32 0.5, %v156_v1  ;;  %v2472_v1 = vld [vmem:[%s2412_s3 + $0x68] sm:$0xff]  ;;  %p1750_p6 = scmp.lt.s32.totalorder (%p2352_p9), %s1749_s28, 18 }
  0x4e   : > { %v1019_v31 = vmul.f32 0.7978846, %v875_v22  ;;  %v1020_v32 = vmul.f32 0.7978846, %v876_v23  ;;  %v879_v36 = vadd.f32 %v735_v29, %v159_v7  ;;  %v880_v42 = vadd.f32 %v736_v34, %v2424_v8 }
  0x4f   : > { %v1021_v35 = vmul.f32 0.7978846, %v877_v28  ;;  %v1022_v41 = vmul.f32 0.7978846, %v878_v33  ;;  %v881_v45 = vadd.f32 %v737_v37, %v2427_v12  ;;  %v594_v46 = vmul.f32 %v450_v38, %v162_v26 }
  0x50   : > { %1908 = vtanh.f32 %v1019_v31  ;;  %v1023_v44 = vmul.f32 0.7978846, %v879_v36  ;;  %v2451_v48 = vmul.f32 0.5, %v157_v2  ;;  %v1024_v49 = vmul.f32 0.7978846, %v880_v42 }
  0x51   : > { %1910 = vtanh.f32 %v1020_v32  ;;  %v451_v50 = vmul.f32 0.044715, %v2439_v39  ;;  %v1025_v51 = vmul.f32 0.7978846, %v881_v45  ;;  %v738_v52 = vmul.f32 %v594_v46, %v162_v26  ;;  %v2496_v32 = vld [vmem:[%s2412_s3 + $0x70] sm:$0xff] }
  0x52   : > { %1912 = vtanh.f32 %v1021_v35  ;;  %v452_v53 = vmul.f32 0.044715, %v2445_v43  ;;  %v2458_v55 = vmul.f32 0.5, %v158_v6  ;;  %v453_v57 = vmul.f32 0.044715, %v2449_v47 }
  0x53   : > { %1914 = vtanh.f32 %v1022_v41  ;;  %v595_v56 = vmul.f32 %v451_v50, %v2439_v39  ;;  %v2465_v59 = vmul.f32 0.5, %v159_v7  ;;  %v882_v60 = vadd.f32 %v738_v52, %v162_v26  ;;  %v2513_v50 = vld [vmem:[%s2412_s3 + $0x80] sm:$0xff] }
  0x54   : > { %1916 = vtanh.f32 %v1023_v44  ;;  %v596_v61 = vmul.f32 %v452_v53, %v2445_v43  ;;  %v597_v63 = vmul.f32 %v453_v57, %v2449_v47  ;;  %v454_v0 = vmul.f32 0.044715, %v2456_v54 }
  0x55   : > { %1918 = vtanh.f32 %v1024_v49  ;;  %v739_v62 = vmul.f32 %v595_v56, %v2439_v39  ;;  %v304_v2 = vmul.f32 0.5, %v2424_v8  ;;  %v1026_v3 = vmul.f32 0.7978846, %v882_v60  ;;  %v2523_v60 = vld [vmem:[%s2412_s3 + $0x88] sm:$0xff] }
  0x56   : > { %1920 = vtanh.f32 %v1025_v51  ;;  %v740_v4 = vmul.f32 %v596_v61, %v2445_v43  ;;  %v455_v5 = vmul.f32 0.044715, %v2463_v58  ;;  %v2478_v6 = vmul.f32 0.5, %v2427_v12 }
  0x57   : > { %v883_v7 = vadd.f32 %v739_v62, %v2439_v39  ;;  %v741_v9 = vmul.f32 %v597_v63, %v2449_v47  ;;  %v598_v10 = vmul.f32 %v454_v0, %v2456_v54  ;;  %1922 = vtanh.f32 %v1026_v3  ;;  %v2530_v3 = vld [vmem:[%s2412_s3 + $0x90] sm:$0xff] }
  0x58   : > { %v884_v11 = vadd.f32 %v740_v4, %v2445_v43  ;;  %v599_v13 = vmul.f32 %v455_v5, %v2463_v58  ;;  %v456_v8 = vmul.f32 0.044715, %v2472_v1  ;;  %v2486_v15 = vmul.f32 0.5, %v162_v26 }
  0x59   : > { %v1027_v16 = vmul.f32 0.7978846, %v883_v7  ;;  %v885_v12 = vadd.f32 %v741_v9, %v2449_v47  ;;  %v742_v17 = vmul.f32 %v598_v10, %v2456_v54  ;;  %v457_v49 = vmul.f32 0.044715, %v2496_v32 }
  0x5a   : > { %v1909_v14 = vpop.eup %1908  ;;  %v1028_v20 = vmul.f32 0.7978846, %v884_v11  ;;  %v743_v21 = vmul.f32 %v599_v13, %v2463_v58  ;;  %v600_v22 = vmul.f32 %v456_v8, %v2472_v1  ;;  %v308_v62 = vmul.f32 0.5, %v2445_v43 }
  0x5b   : > { %v1911_v18 = vpop.eup %1910  ;;  %v1307_v19 = vadd.f32 1.0, %v1909_v14  ;;  %1924 = vtanh.f32 %v1027_v16  ;;  %v1029_v25 = vmul.f32 0.7978846, %v885_v12  ;;  %v886_v26 = vadd.f32 %v742_v17, %v2456_v54 }
  0x5c   : > { %v1913_v23 = vpop.eup %1912  ;;  %v1308_v24 = vadd.f32 1.0, %v1911_v18  ;;  %1926 = vtanh.f32 %v1028_v20  ;;  %v887_v31 = vadd.f32 %v743_v21, %v2463_v58  ;;  %v744_v42 = vmul.f32 %v600_v22, %v2472_v1 }
  0x5d   : > { %v1915_v28 = vpop.eup %1914  ;;  %v1451_v29 = vmul.f32 %v1307_v19, %v2433_v27  ;;  %v1309_v30 = vadd.f32 1.0, %v1913_v23  ;;  %1928 = vtanh.f32 %v1029_v25  ;;  %v1030_v36 = vmul.f32 0.7978846, %v886_v26 }
  0x5e   : > { %v1917_v33 = vpop.eup %1916  ;;  %v1452_v34 = vmul.f32 %v1308_v24, %v2441_v40  ;;  %v1310_v35 = vadd.f32 1.0, %v1915_v28  ;;  %v1031_v41 = vmul.f32 0.7978846, %v887_v31  ;;  %v2507_v40 = vld [vmem:[%s2412_s3 + $0x78] sm:$0xff]  ;;  %v888_v52 = vadd.f32 %v744_v42, %v2472_v1 }
  0x5f   : > { %v1919_v37 = vpop.eup %1918  ;;  %1595 = vst [vmem:[%s2501_s16] sm:$0xff] %v1451_v29  ;;  %v1453_v27 = vmul.f32 %v1309_v30, %v2451_v48  ;;  %v1311_v38 = vadd.f32 1.0, %v1917_v33  ;;  %1930 = vtanh.f32 %v1030_v36  ;;  %v601_v56 = vmul.f32 %v457_v49, %v2496_v32  ;;  %v2554_v24 = vld [vmem:[%s2412_s3 + $0x98] sm:$0xff]  ;;  %v2560_v36 = vld [vmem:[%s2412_s3 + $0xa0] sm:$0xff] }
  0x60   : > { %v1921_v44 = vpop.eup %1920  ;;  %1596 = vst [vmem:[%s2501_s16 + $0x8] sm:$0xff] %v1452_v34  ;;  %v1454_v45 = vmul.f32 %v1310_v35, %v2458_v55  ;;  %v1312_v46 = vadd.f32 1.0, %v1919_v37  ;;  %1932 = vtanh.f32 %v1031_v41  ;;  %v307_v55 = vmul.f32 0.5, %v2439_v39  ;;  %v2566_v41 = vld [vmem:[%s2412_s3 + $0xa8] sm:$0xff] }
  0x61   : > { %1597 = vst [vmem:[%s2501_s16 + $0x10] sm:$0xff] %v1453_v27  ;;  %v1455_v48 = vmul.f32 %v1311_v38, %v2465_v59  ;;  %v1313_v51 = vadd.f32 1.0, %v1921_v44  ;;  %v458_v57 = vmul.f32 0.044715, %v2507_v40  ;;  %v1923_v61 = vpop.eup %1922  ;;  %v1032_v63 = vmul.f32 0.7978846, %v888_v52 }
  0x62   : > { %1598 = vst [vmem:[%s2501_s16 + $0x18] sm:$0xff] %v1454_v45  ;;  %v1456_v53 = vmul.f32 %v1312_v46, %v304_v2  ;;  %v459_v0 = vmul.f32 0.044715, %v2513_v50  ;;  %v1314_v39 = vadd.f32 1.0, %v1923_v61  ;;  %v309_v2 = vmul.f32 0.5, %v2449_v47  ;;  %v2573_v52 = vld [vmem:[%s2412_s3 + $0xb0] sm:$0xff] }
  0x63   : > { %1599 = vst [vmem:[%s2501_s16 + $0x20] sm:$0xff] %v1455_v48  ;;  %v1457_v59 = vmul.f32 %v1313_v51, %v2478_v6  ;;  %v745_v4 = vmul.f32 %v601_v56, %v2496_v32  ;;  %v602_v5 = vmul.f32 %v458_v57, %v2507_v40  ;;  %v310_v7 = vmul.f32 0.5, %v2456_v54 }
  0x64   : > { %1600 = vst [vmem:[%s2501_s16 + $0x28] sm:$0xff] %v1456_v53  ;;  %1934 = vtanh.f32 %v1032_v63  ;;  %v603_v43 = vmul.f32 %v459_v0, %v2513_v50  ;;  %v460_v6 = vmul.f32 0.044715, %v2523_v60  ;;  %v1458_v10 = vmul.f32 %v1314_v39, %v2486_v15  ;;  %v2576_v53 = vld [vmem:[%s2412_s3 + $0xb8] sm:$0xff]  ;;  %v2586_v63 = vld [vmem:[%s2412_s3 + $0xc0] sm:$0xff] }
  0x65   : > { %1601 = vst [vmem:[%s2501_s16 + $0x30] sm:$0xff] %v1457_v59  ;;  %v1925_v9 = vpop.eup %1924  ;;  %v889_v11 = vadd.f32 %v745_v4, %v2496_v32  ;;  %v746_v47 = vmul.f32 %v602_v5, %v2507_v40  ;;  %v461_v13 = vmul.f32 0.044715, %v2530_v3  ;;  %v311_v16 = vmul.f32 0.5, %v2463_v58 }
  0x66   : > { %v1927_v8 = vpop.eup %1926  ;;  %v1315_v14 = vadd.f32 1.0, %v1925_v9  ;;  %v747_v54 = vmul.f32 %v603_v43, %v2513_v50  ;;  %v604_v12 = vmul.f32 %v460_v6, %v2523_v60  ;;  %1603 = vst.msk [vmem:[%s2501_s16 + $0x38] sm:$0xff] %vm1602_vm0, %v1458_v10  ;;  %v462_v38 = vmul.f32 0.044715, %v2554_v24 }
  0x67   : > { %v1929_v17 = vpop.eup %1928  ;;  %v1316_v15 = vadd.f32 1.0, %v1927_v8  ;;  %v1033_v18 = vmul.f32 0.7978846, %v889_v11  ;;  %v890_v19 = vadd.f32 %v746_v47, %v2507_v40  ;;  %v605_v20 = vmul.f32 %v461_v13, %v2530_v3 }
  0x68   : > { %v1459_v21 = vmul.f32 %v1315_v14, %v307_v55  ;;  %v1317_v22 = vadd.f32 1.0, %v1929_v17  ;;  %v891_v58 = vadd.f32 %v747_v54, %v2513_v50  ;;  %v748_v23 = vmul.f32 %v604_v12, %v2523_v60 }
  0x69   : > { %v1931_v25 = vpop.eup %1930  ;;  %v1460_v26 = vmul.f32 %v1316_v15, %v308_v62  ;;  %1936 = vtanh.f32 %v1033_v18  ;;  %v1034_v28 = vmul.f32 0.7978846, %v890_v19  ;;  %v749_v29 = vmul.f32 %v605_v20, %v2530_v3 }
  0x6a   : > { %v1933_v30 = vpop.eup %1932  ;;  %1604 = vst [vmem:[%s2501_s16 + $0x40] sm:$0xff] %v1459_v21  ;;  %v1461_v31 = vmul.f32 %v1317_v22, %v309_v2  ;;  %v1318_v33 = vadd.f32 1.0, %v1931_v25  ;;  %v1035_v34 = vmul.f32 0.7978846, %v891_v58  ;;  %v892_v35 = vadd.f32 %v748_v23, %v2523_v60  ;;  %v2593_v2 = vld [vmem:[%s2412_s3 + $0xc8] sm:$0xff] }
  0x6b   : > { %1605 = vst [vmem:[%s2501_s16 + $0x48] sm:$0xff] %v1460_v26  ;;  %v1319_v37 = vadd.f32 1.0, %v1933_v30  ;;  %1938 = vtanh.f32 %v1034_v28  ;;  %v893_v27 = vadd.f32 %v749_v29, %v2530_v3  ;;  %v312_v44 = vmul.f32 0.5, %v2472_v1 }
  0x6c   : > { %1606 = vst [vmem:[%s2501_s16 + $0x50] sm:$0xff] %v1461_v31  ;;  %v1462_v42 = vmul.f32 %v1318_v33, %v310_v7  ;;  %1940 = vtanh.f32 %v1035_v34  ;;  %v1036_v45 = vmul.f32 0.7978846, %v892_v35  ;;  %v606_v48 = vmul.f32 %v462_v38, %v2554_v24  ;;  %v2617_v33 = vld [vmem:[%s2412_s3 + $0xd0] sm:$0xff] }
  0x6d   : > { %v1463_v46 = vmul.f32 %v1319_v37, %v311_v16  ;;  %v1037_v49 = vmul.f32 0.7978846, %v893_v27  ;;  %v463_v51 = vmul.f32 0.044715, %v2560_v36  ;;  %v313_v56 = vmul.f32 0.5, %v2496_v32 }
  0x6e   : > { %v1935_v55 = vpop.eup %1934  ;;  %1607 = vst [vmem:[%s2501_s16 + $0x58] sm:$0xff] %v1462_v42  ;;  %v314_v1 = vmul.f32 0.5, %v2507_v40  ;;  %1942 = vtanh.f32 %v1036_v45  ;;  %v464_v57 = vmul.f32 0.044715, %v2566_v41  ;;  %v750_v59 = vmul.f32 %v606_v48, %v2554_v24  ;;  %v2621_v42 = vld [vmem:[%s2412_s3 + $0xd8] sm:$0xff] }
  0x6f   : > { %1608 = vst [vmem:[%s2501_s16 + $0x60] sm:$0xff] %v1463_v46  ;;  %v1320_v61 = vadd.f32 1.0, %v1935_v55  ;;  %1944 = vtanh.f32 %v1037_v49  ;;  %v607_v62 = vmul.f32 %v463_v51, %v2560_v36  ;;  %v315_v0 = vmul.f32 0.5, %v2513_v50  ;;  %v2628_v49 = vld [vmem:[%s2412_s3 + $0xe0] sm:$0xff] }
  0x70   : > { %v608_v39 = vmul.f32 %v464_v57, %v2566_v41  ;;  %v465_v32 = vmul.f32 0.044715, %v2573_v52  ;;  %v466_v40 = vmul.f32 0.044715, %v2576_v53  ;;  %v316_v5 = vmul.f32 0.5, %v2523_v60 }
  0x71   : > { %v1464_v4 = vmul.f32 %v1320_v61, %v312_v44  ;;  %v894_v7 = vadd.f32 %v750_v59, %v2554_v24  ;;  %v751_v43 = vmul.f32 %v607_v62, %v2560_v36  ;;  %v467_v10 = vmul.f32 0.044715, %v2586_v63  ;;  %v2638_v59 = vld [vmem:[%s2412_s3 + $0xf0] sm:$0xff] }
  0x72   : > { %v752_v6 = vmul.f32 %v608_v39, %v2566_v41  ;;  %v609_v9 = vmul.f32 %v465_v32, %v2573_v52  ;;  %v610_v50 = vmul.f32 %v466_v40, %v2576_v53  ;;  %v317_v47 = vmul.f32 0.5, %v2530_v3 }
  0x73   : > { %v1937_v11 = vpop.eup %1936  ;;  %1609 = vst [vmem:[%s2501_s16 + $0x68] sm:$0xff] %v1464_v4  ;;  %v1038_v13 = vmul.f32 0.7978846, %v894_v7  ;;  %v895_v8 = vadd.f32 %v751_v43, %v2560_v36  ;;  %v468_v60 = vmul.f32 0.044715, %v2593_v2  ;;  %v611_v18 = vmul.f32 %v467_v10, %v2586_v63  ;;  %v2649_v4 = vld [vmem:[%s2412_s3 + $0xf8] sm:$0xff] }
  0x74   : > { %v1321_v14 = vadd.f32 1.0, %v1937_v11  ;;  %v896_v16 = vadd.f32 %v752_v6, %v2566_v41  ;;  %v753_v54 = vmul.f32 %v609_v9, %v2573_v52  ;;  %v754_v12 = vmul.f32 %v610_v50, %v2576_v53 }
  0x75   : > { %v1939_v17 = vpop.eup %1938  ;;  %1946 = vtanh.f32 %v1038_v13  ;;  %v1039_v15 = vmul.f32 0.7978846, %v895_v8  ;;  %v612_v3 = vmul.f32 %v468_v60, %v2593_v2  ;;  %v755_v26 = vmul.f32 %v611_v18, %v2586_v63 }
  0x76   : > { %v1941_v19 = vpop.eup %1940  ;;  %v1465_v20 = vmul.f32 %v1321_v14, %v313_v56  ;;  %v1322_v21 = vadd.f32 1.0, %v1939_v17  ;;  %v1040_v22 = vmul.f32 0.7978846, %v896_v16  ;;  %v897_v58 = vadd.f32 %v753_v54, %v2573_v52  ;;  %v2633_v56 = vld [vmem:[%s2412_s3 + $0xe8] sm:$0xff] }
  0x77   : > { %v1323_v23 = vadd.f32 1.0, %v1941_v19  ;;  %1948 = vtanh.f32 %v1039_v15  ;;  %v898_v25 = vadd.f32 %v754_v12, %v2576_v53  ;;  %v756_v31 = vmul.f32 %v612_v3, %v2593_v2 }
  0x78   : > { %v1943_v28 = vpop.eup %1942  ;;  %1610 = vst [vmem:[%s2501_s16 + $0x70] sm:$0xff] %v1465_v20  ;;  %v1466_v29 = vmul.f32 %v1322_v21, %v314_v1  ;;  %1950 = vtanh.f32 %v1040_v22  ;;  %v1041_v30 = vmul.f32 0.7978846, %v897_v58  ;;  %v899_v38 = vadd.f32 %v755_v26, %v2586_v63 }
  0x79   : > { %v1945_v34 = vpop.eup %1944  ;;  %v1467_v35 = vmul.f32 %v1323_v23, %v315_v0  ;;  %v1324_v37 = vadd.f32 1.0, %v1943_v28  ;;  %v1042_v27 = vmul.f32 0.7978846, %v898_v25  ;;  %v318_v45 = vmul.f32 0.5, %v2554_v24 }
  0x7a   : > { %1611 = vst.msk [vmem:[%s2501_s16 + $0x78] sm:$0xff] %vm1602_vm0, %v1466_v29  ;;  %v1325_v44 = vadd.f32 1.0, %v1945_v34  ;;  %1952 = vtanh.f32 %v1041_v30  ;;  %v900_v46 = vadd.f32 %v756_v31, %v2593_v2  ;;  %v1043_v51 = vmul.f32 0.7978846, %v899_v38  ;;  %v2672_v31 = vld [vmem:[%s2412_s3 + $0x100] sm:$0xff]  ;;  %v2678_v38 = vld [vmem:[%s2412_s3 + $0x108] sm:$0xff] }
  0x7b   : > { %1612 = vst [vmem:[%s2501_s16 + $0x80] sm:$0xff] %v1467_v35  ;;  %v1468_v48 = vmul.f32 %v1324_v37, %v316_v5  ;;  %1954 = vtanh.f32 %v1042_v27  ;;  %v469_v55 = vmul.f32 0.044715, %v2617_v33  ;;  %v319_v57 = vmul.f32 0.5, %v2560_v36 }
  0x7c   : > { %v1469_v1 = vmul.f32 %v1325_v44, %v317_v47  ;;  %v1044_v61 = vmul.f32 0.7978846, %v900_v46  ;;  %v470_v24 = vmul.f32 0.044715, %v2621_v42  ;;  %v320_v62 = vmul.f32 0.5, %v2566_v41 }
  0x7d   : > { %1613 = vst [vmem:[%s2501_s16 + $0x88] sm:$0xff] %v1468_v48  ;;  %1956 = vtanh.f32 %v1043_v51  ;;  %v613_v0 = vmul.f32 %v469_v55, %v2617_v33  ;;  %v471_v39 = vmul.f32 0.044715, %v2628_v49  ;;  %v321_v32 = vmul.f32 0.5, %v2573_v52  ;;  %v2681_v51 = vld [vmem:[%s2412_s3 + $0x110] sm:$0xff] }
  0x7e   : > { %1614 = vst [vmem:[%s2501_s16 + $0x90] sm:$0xff] %v1469_v1  ;;  %1958 = vtanh.f32 %v1044_v61  ;;  %v614_v40 = vmul.f32 %v470_v24, %v2621_v42  ;;  %v472_v36 = vmul.f32 0.044715, %v2633_v56  ;;  %v322_v7 = vmul.f32 0.5, %v2576_v53  ;;  %v2688_v61 = vld [vmem:[%s2412_s3 + $0x118] sm:$0xff] }
  0x7f   : > { %v1947_v5 = vpop.eup %1946  ;;  %v757_v41 = vmul.f32 %v613_v0, %v2617_v33  ;;  %v615_v43 = vmul.f32 %v471_v39, %v2628_v49  ;;  %v473_v6 = vmul.f32 0.044715, %v2638_v59  ;;  %v323_v50 = vmul.f32 0.5, %v2586_v63  ;;  %v2695_v39 = vld [vmem:[%s2412_s3 + $0x120] sm:$0xff] }
  0x80   : > { %v1326_v9 = vadd.f32 1.0, %v1947_v5  ;;  %v758_v52 = vmul.f32 %v614_v40, %v2621_v42  ;;  %v616_v10 = vmul.f32 %v472_v36, %v2633_v56  ;;  %v474_v8 = vmul.f32 0.044715, %v2649_v4  ;;  %v2700_v5 = vld [vmem:[%s2412_s3 + $0x128] sm:$0xff] }
  0x81   : > { %v1949_v11 = vpop.eup %1948  ;;  %v901_v47 = vadd.f32 %v757_v41, %v2617_v33  ;;  %v759_v13 = vmul.f32 %v615_v43, %v2628_v49  ;;  %v617_v53 = vmul.f32 %v473_v6, %v2638_v59  ;;  %v324_v37 = vmul.f32 0.5, %v2593_v2 }
  0x82   : > { %v1951_v60 = vpop.eup %1950  ;;  %v1470_v14 = vmul.f32 %v1326_v9, %v318_v45  ;;  %v1327_v16 = vadd.f32 1.0, %v1949_v11  ;;  %v902_v54 = vadd.f32 %v758_v52, %v2621_v42  ;;  %v760_v63 = vmul.f32 %v616_v10, %v2633_v56 }
  0x83   : > { %v1328_v12 = vadd.f32 1.0, %v1951_v60  ;;  %v1045_v17 = vmul.f32 0.7978846, %v901_v47  ;;  %v903_v15 = vadd.f32 %v759_v13, %v2628_v49  ;;  %v761_v18 = vmul.f32 %v617_v53, %v2638_v59 }
  0x84   : > { %v1953_v3 = vpop.eup %1952  ;;  %1615 = vst [vmem:[%s2501_s16 + $0x98] sm:$0xff] %v1470_v14  ;;  %v1471_v19 = vmul.f32 %v1327_v16, %v319_v57  ;;  %v1046_v20 = vmul.f32 0.7978846, %v902_v54  ;;  %v904_v21 = vadd.f32 %v760_v63, %v2633_v56  ;;  %v618_v22 = vmul.f32 %v474_v8, %v2649_v4 }
  0x85   : > { %v1955_v58 = vpop.eup %1954  ;;  %v1472_v23 = vmul.f32 %v1328_v12, %v320_v62  ;;  %v1329_v25 = vadd.f32 1.0, %v1953_v3  ;;  %1960 = vtanh.f32 %v1045_v17  ;;  %v1047_v26 = vmul.f32 0.7978846, %v903_v15 }
  0x86   : > { %1616 = vst [vmem:[%s2501_s16 + $0xa0] sm:$0xff] %v1471_v19  ;;  %v1330_v28 = vadd.f32 1.0, %v1955_v58  ;;  %1962 = vtanh.f32 %v1046_v20  ;;  %v1048_v29 = vmul.f32 0.7978846, %v904_v21  ;;  %v905_v30 = vadd.f32 %v761_v18, %v2638_v59 }
  0x87   : > { %v1957_v34 = vpop.eup %1956  ;;  %1617 = vst [vmem:[%s2501_s16 + $0xa8] sm:$0xff] %v1472_v23  ;;  %v1473_v35 = vmul.f32 %v1329_v25, %v321_v32  ;;  %1964 = vtanh.f32 %v1047_v26  ;;  %v762_v27 = vmul.f32 %v618_v22, %v2649_v4  ;;  %v325_v2 = vmul.f32 0.5, %v2617_v33  ;;  %v2726_v25 = vld [vmem:[%s2412_s3 + $0x130] sm:$0xff] }
  0x88   : > { %v1959_v44 = vpop.eup %1958  ;;  %v1474_v45 = vmul.f32 %v1330_v28, %v322_v7  ;;  %v1331_v46 = vadd.f32 1.0, %v1957_v34  ;;  %1966 = vtanh.f32 %v1048_v29  ;;  %v1049_v48 = vmul.f32 0.7978846, %v905_v30  ;;  %v2731_v34 = vld [vmem:[%s2412_s3 + $0x138] sm:$0xff] }
  0x89   : > { %1618 = vst [vmem:[%s2501_s16 + $0xb0] sm:$0xff] %v1473_v35  ;;  %v1332_v55 = vadd.f32 1.0, %v1959_v44  ;;  %v906_v1 = vadd.f32 %v762_v27, %v2649_v4  ;;  %v475_v57 = vmul.f32 0.044715, %v2672_v31  ;;  %v326_v62 = vmul.f32 0.5, %v2621_v42  ;;  %v2736_v44 = vld [vmem:[%s2412_s3 + $0x140] sm:$0xff] }
  0x8a   : > { %1619 = vst.msk [vmem:[%s2501_s16 + $0xb8] sm:$0xff] %vm1602_vm0, %v1474_v45  ;;  %v1475_v24 = vmul.f32 %v1331_v46, %v323_v50  ;;  %1968 = vtanh.f32 %v1049_v48  ;;  %v476_v0 = vmul.f32 0.044715, %v2678_v38  ;;  %v477_v36 = vmul.f32 0.044715, %v2681_v51 }
  0x8b   : > { %v1476_v32 = vmul.f32 %v1332_v55, %v324_v37  ;;  %v1050_v40 = vmul.f32 0.7978846, %v906_v1  ;;  %v619_v33 = vmul.f32 %v475_v57, %v2672_v31  ;;  %v327_v7 = vmul.f32 0.5, %v2628_v49  ;;  %v2742_v55 = vld [vmem:[%s2412_s3 + $0x148] sm:$0xff] }
  0x8c   : > { %1620 = vst [vmem:[%s2501_s16 + $0xc0] sm:$0xff] %v1475_v24  ;;  %v328_v41 = vmul.f32 0.5, %v2633_v56  ;;  %v620_v42 = vmul.f32 %v476_v0, %v2678_v38  ;;  %v478_v43 = vmul.f32 0.044715, %v2688_v61  ;;  %v621_v9 = vmul.f32 %v477_v36, %v2681_v51 }
  0x8d   : > { %1621 = vst [vmem:[%s2501_s16 + $0xc8] sm:$0xff] %v1476_v32  ;;  %1970 = vtanh.f32 %v1050_v40  ;;  %v763_v6 = vmul.f32 %v619_v33, %v2672_v31  ;;  %v479_v50 = vmul.f32 0.044715, %v2695_v39  ;;  %v329_v52 = vmul.f32 0.5, %v2638_v59  ;;  %v2751_v40 = vld [vmem:[%s2412_s3 + $0x150] sm:$0xff] }
  0x8e   : > { %v764_v10 = vmul.f32 %v620_v42, %v2678_v38  ;;  %v622_v49 = vmul.f32 %v478_v43, %v2688_v61  ;;  %v480_v56 = vmul.f32 0.044715, %v2700_v5  ;;  %v330_v47 = vmul.f32 0.5, %v2649_v4 }
  0x8f   : > { %v1961_v11 = vpop.eup %1960  ;;  %v907_v13 = vadd.f32 %v763_v6, %v2672_v31  ;;  %v765_v53 = vmul.f32 %v621_v9, %v2681_v51  ;;  %v623_v8 = vmul.f32 %v479_v50, %v2695_v39  ;;  %v331_v45 = vmul.f32 0.5, %v2672_v31 }
  0x90   : > { %v1963_v60 = vpop.eup %1962  ;;  %v1333_v14 = vadd.f32 1.0, %v1961_v11  ;;  %v908_v16 = vadd.f32 %v764_v10, %v2678_v38  ;;  %v766_v59 = vmul.f32 %v622_v49, %v2688_v61  ;;  %v624_v54 = vmul.f32 %v480_v56, %v2700_v5 }
  0x91   : > { %v1965_v63 = vpop.eup %1964  ;;  %v1334_v12 = vadd.f32 1.0, %v1963_v60  ;;  %v1051_v17 = vmul.f32 0.7978846, %v907_v13  ;;  %v909_v4 = vadd.f32 %v765_v53, %v2681_v51  ;;  %v767_v15 = vmul.f32 %v623_v8, %v2695_v39 }
  0x92   : > { %v1967_v18 = vpop.eup %1966  ;;  %v1477_v3 = vmul.f32 %v1333_v14, %v325_v2  ;;  %v1335_v19 = vadd.f32 1.0, %v1965_v63  ;;  %v1052_v20 = vmul.f32 0.7978846, %v908_v16  ;;  %v910_v21 = vadd.f32 %v766_v59, %v2688_v61 }
  0x93   : > { %v1478_v22 = vmul.f32 %v1334_v12, %v326_v62  ;;  %v1336_v58 = vadd.f32 1.0, %v1967_v18  ;;  %1972 = vtanh.f32 %v1051_v17  ;;  %v1053_v23 = vmul.f32 0.7978846, %v909_v4 }
  0x94   : > { %v1969_v26 = vpop.eup %1968  ;;  %1622 = vst [vmem:[%s2501_s16 + $0xd0] sm:$0xff] %v1477_v3  ;;  %v1479_v28 = vmul.f32 %v1335_v19, %v327_v7  ;;  %1974 = vtanh.f32 %v1052_v20  ;;  %v1054_v29 = vmul.f32 0.7978846, %v910_v21  ;;  %v911_v30 = vadd.f32 %v767_v15, %v2695_v39  ;;  %v2781_v19 = vld [vmem:[%s2412_s3 + $0x160] sm:$0xff] }
  0x95   : > { %1623 = vst [vmem:[%s2501_s16 + $0xd8] sm:$0xff] %v1478_v22  ;;  %v1480_v35 = vmul.f32 %v1336_v58, %v328_v41  ;;  %v1337_v37 = vadd.f32 1.0, %v1969_v26  ;;  %1976 = vtanh.f32 %v1053_v23  ;;  %v768_v27 = vmul.f32 %v624_v54, %v2700_v5  ;;  %v2758_v41 = vld [vmem:[%s2412_s3 + $0x158] sm:$0xff]  ;;  %v2784_v58 = vld [vmem:[%s2412_s3 + $0x168] sm:$0xff] }
  0x96   : > { %1624 = vst [vmem:[%s2501_s16 + $0xe0] sm:$0xff] %v1479_v28  ;;  %1978 = vtanh.f32 %v1054_v29  ;;  %v1055_v46 = vmul.f32 0.7978846, %v911_v30  ;;  %v481_v48 = vmul.f32 0.044715, %v2726_v25  ;;  %v332_v57 = vmul.f32 0.5, %v2678_v38 }
  0x97   : > { %v1971_v2 = vpop.eup %1970  ;;  %1625 = vst [vmem:[%s2501_s16 + $0xe8] sm:$0xff] %v1480_v35  ;;  %v1481_v1 = vmul.f32 %v1337_v37, %v329_v52  ;;  %v912_v24 = vadd.f32 %v768_v27, %v2700_v5  ;;  %v482_v62 = vmul.f32 0.044715, %v2731_v34  ;;  %v483_v32 = vmul.f32 0.044715, %v2736_v44  ;;  %v2790_v30 = vld [vmem:[%s2412_s3 + $0x170] sm:$0xff] }
  0x98   : > { %v1338_v0 = vadd.f32 1.0, %v1971_v2  ;;  %1980 = vtanh.f32 %v1055_v46  ;;  %v625_v31 = vmul.f32 %v481_v48, %v2726_v25  ;;  %v333_v33 = vmul.f32 0.5, %v2681_v51 }
  0x99   : > { %1626 = vst [vmem:[%s2501_s16 + $0xf0] sm:$0xff] %v1481_v1  ;;  %v1056_v36 = vmul.f32 0.7978846, %v912_v24  ;;  %v626_v7 = vmul.f32 %v482_v62, %v2731_v34  ;;  %v484_v38 = vmul.f32 0.044715, %v2742_v55  ;;  %v334_v43 = vmul.f32 0.5, %v2688_v61 }
  0x9a   : > { %v1482_v42 = vmul.f32 %v1338_v0, %v330_v47  ;;  %v769_v6 = vmul.f32 %v625_v31, %v2726_v25  ;;  %v627_v9 = vmul.f32 %v483_v32, %v2736_v44  ;;  %v485_v51 = vmul.f32 0.044715, %v2751_v40  ;;  %v2799_v1 = vld [vmem:[%s2412_s3 + $0x178] sm:$0xff] }
  0x9b   : > { %1982 = vtanh.f32 %v1056_v36  ;;  %v770_v50 = vmul.f32 %v626_v7, %v2731_v34  ;;  %v628_v52 = vmul.f32 %v484_v38, %v2742_v55  ;;  %v335_v10 = vmul.f32 0.5, %v2695_v39  ;;  %v2807_v36 = vld [vmem:[%s2412_s3 + $0x180] sm:$0xff] }
  0x9c   : > { %1627 = vst.msk [vmem:[%s2501_s16 + $0xf8] sm:$0xff] %vm1602_vm0, %v1482_v42  ;;  %v913_v49 = vadd.f32 %v769_v6, %v2726_v25  ;;  %v771_v56 = vmul.f32 %v627_v9, %v2736_v44  ;;  %v486_v61 = vmul.f32 0.044715, %v2758_v41  ;;  %v336_v47 = vmul.f32 0.5, %v2700_v5 }
  0x9d   : > { %v1973_v11 = vpop.eup %1972  ;;  %v914_v13 = vadd.f32 %v770_v50, %v2731_v34  ;;  %v772_v53 = vmul.f32 %v628_v52, %v2742_v55  ;;  %v629_v8 = vmul.f32 %v485_v51, %v2751_v40  ;;  %v487_v27 = vmul.f32 0.044715, %v2781_v19 }
  0x9e   : > { %v1975_v60 = vpop.eup %1974  ;;  %v1339_v14 = vadd.f32 1.0, %v1973_v11  ;;  %v1057_v16 = vmul.f32 0.7978846, %v913_v49  ;;  %v915_v39 = vadd.f32 %v771_v56, %v2736_v44  ;;  %v630_v59 = vmul.f32 %v486_v61, %v2758_v41 }
  0x9f   : > { %v1977_v54 = vpop.eup %1976  ;;  %v1340_v63 = vadd.f32 1.0, %v1975_v60  ;;  %v1058_v12 = vmul.f32 0.7978846, %v914_v13  ;;  %v916_v5 = vadd.f32 %v772_v53, %v2742_v55  ;;  %v773_v17 = vmul.f32 %v629_v8, %v2751_v40 }
  0xa0   : > { %v1979_v4 = vpop.eup %1978  ;;  %v1483_v15 = vmul.f32 %v1339_v14, %v331_v45  ;;  %v1341_v18 = vadd.f32 1.0, %v1977_v54  ;;  %1984 = vtanh.f32 %v1057_v16  ;;  %v1059_v3 = vmul.f32 0.7978846, %v915_v39 }
  0xa1   : > { %v1484_v20 = vmul.f32 %v1340_v63, %v332_v57  ;;  %v1342_v21 = vadd.f32 1.0, %v1979_v4  ;;  %1986 = vtanh.f32 %v1058_v12  ;;  %v1060_v22 = vmul.f32 0.7978846, %v916_v5  ;;  %v2833_v5 = vld [vmem:[%s2412_s3 + $0x190] sm:$0xff] }
  0xa2   : > { %v1981_v23 = vpop.eup %1980  ;;  %1628 = vst [vmem:[%s2501_s16 + $0x100] sm:$0xff] %v1483_v15  ;;  %v1485_v26 = vmul.f32 %v1341_v18, %v333_v33  ;;  %1988 = vtanh.f32 %v1059_v3  ;;  %v917_v28 = vadd.f32 %v773_v17, %v2751_v40  ;;  %v774_v29 = vmul.f32 %v630_v59, %v2758_v41  ;;  %v2837_v18 = vld [vmem:[%s2412_s3 + $0x198] sm:$0xff] }
  0xa3   : > { %1629 = vst [vmem:[%s2501_s16 + $0x108] sm:$0xff] %v1484_v20  ;;  %v1486_v35 = vmul.f32 %v1342_v21, %v334_v43  ;;  %v1343_v37 = vadd.f32 1.0, %v1981_v23  ;;  %1990 = vtanh.f32 %v1060_v22  ;;  %v337_v45 = vmul.f32 0.5, %v2726_v25  ;;  %v2815_v43 = vld [vmem:[%s2412_s3 + $0x188] sm:$0xff]  ;;  %v2843_v22 = vld [vmem:[%s2412_s3 + $0x1a0] sm:$0xff] }
  0xa4   : > { %1630 = vst [vmem:[%s2501_s16 + $0x110] sm:$0xff] %v1485_v26  ;;  %v1061_v46 = vmul.f32 0.7978846, %v917_v28  ;;  %v918_v48 = vadd.f32 %v774_v29, %v2758_v41  ;;  %v488_v2 = vmul.f32 0.044715, %v2784_v58  ;;  %v338_v62 = vmul.f32 0.5, %v2731_v34 }
  0xa5   : > { %v1983_v57 = vpop.eup %1982  ;;  %1631 = vst [vmem:[%s2501_s16 + $0x118] sm:$0xff] %v1486_v35  ;;  %v1487_v24 = vmul.f32 %v1343_v37, %v335_v10  ;;  %v631_v0 = vmul.f32 %v487_v27, %v2781_v19  ;;  %v489_v31 = vmul.f32 0.044715, %v2790_v30  ;;  %v339_v7 = vmul.f32 0.5, %v2736_v44 }
  0xa6   : > { %v1344_v32 = vadd.f32 1.0, %v1983_v57  ;;  %1992 = vtanh.f32 %v1061_v46  ;;  %v1062_v25 = vmul.f32 0.7978846, %v918_v48  ;;  %v632_v33 = vmul.f32 %v488_v2, %v2784_v58 }
  0xa7   : > { %1632 = vst [vmem:[%s2501_s16 + $0x120] sm:$0xff] %v1487_v24  ;;  %v775_v38 = vmul.f32 %v631_v0, %v2781_v19  ;;  %v633_v42 = vmul.f32 %v489_v31, %v2790_v30  ;;  %v490_v34 = vmul.f32 0.044715, %v2799_v1  ;;  %v340_v9 = vmul.f32 0.5, %v2742_v55  ;;  %v2858_v24 = vld [vmem:[%s2412_s3 + $0x1a8] sm:$0xff] }
  0xa8   : > { %v1488_v6 = vmul.f32 %v1344_v32, %v336_v47  ;;  %1994 = vtanh.f32 %v1062_v25  ;;  %v776_v50 = vmul.f32 %v632_v33, %v2784_v58  ;;  %v491_v10 = vmul.f32 0.044715, %v2807_v36 }
  0xa9   : > { %v919_v52 = vadd.f32 %v775_v38, %v2781_v19  ;;  %v777_v51 = vmul.f32 %v633_v42, %v2790_v30  ;;  %v634_v44 = vmul.f32 %v490_v34, %v2799_v1  ;;  %v341_v56 = vmul.f32 0.5, %v2751_v40  ;;  %v2865_v38 = vld [vmem:[%s2412_s3 + $0x1b0] sm:$0xff]  ;;  %v2868_v42 = vld [vmem:[%s2412_s3 + $0x1b8] sm:$0xff] }
  0xaa   : > { %v1985_v49 = vpop.eup %1984  ;;  %1633 = vst [vmem:[%s2501_s16 + $0x128] sm:$0xff] %v1488_v6  ;;  %v342_v61 = vmul.f32 0.5, %v2758_v41  ;;  %v920_v11 = vadd.f32 %v776_v50, %v2784_v58  ;;  %v492_v55 = vmul.f32 0.044715, %v2815_v43  ;;  %v635_v40 = vmul.f32 %v491_v10, %v2807_v36 }
  0xab   : > { %v1987_v47 = vpop.eup %1986  ;;  %v1345_v13 = vadd.f32 1.0, %v1985_v49  ;;  %v1063_v53 = vmul.f32 0.7978846, %v919_v52  ;;  %v921_v8 = vadd.f32 %v777_v51, %v2790_v30  ;;  %v778_v60 = vmul.f32 %v634_v44, %v2799_v1 }
  0xac   : > { %v1989_v14 = vpop.eup %1988  ;;  %v1346_v16 = vadd.f32 1.0, %v1987_v47  ;;  %v1064_v39 = vmul.f32 0.7978846, %v920_v11  ;;  %v636_v41 = vmul.f32 %v492_v55, %v2815_v43  ;;  %v779_v20 = vmul.f32 %v635_v40, %v2807_v36 }
  0xad   : > { %v1991_v59 = vpop.eup %1990  ;;  %v1489_v54 = vmul.f32 %v1345_v13, %v337_v45  ;;  %v1347_v63 = vadd.f32 1.0, %v1989_v14  ;;  %1996 = vtanh.f32 %v1063_v53  ;;  %v1065_v12 = vmul.f32 0.7978846, %v921_v8 }
  0xae   : > { %v1490_v17 = vmul.f32 %v1346_v16, %v338_v62  ;;  %v1348_v4 = vadd.f32 1.0, %v1991_v59  ;;  %1998 = vtanh.f32 %v1064_v39  ;;  %v922_v15 = vadd.f32 %v778_v60, %v2799_v1 }
  0xaf   : > { %1634 = vst [vmem:[%s2501_s16 + $0x130] sm:$0xff] %v1489_v54  ;;  %v1491_v3 = vmul.f32 %v1347_v63, %v339_v7  ;;  %2000 = vtanh.f32 %v1065_v12  ;;  %v780_v21 = vmul.f32 %v636_v41, %v2815_v43  ;;  %v343_v28 = vmul.f32 0.5, %v2781_v19  ;;  %v2889_v63 = vld [vmem:[%s2412_s3 + $0x1c0] sm:$0xff]  ;;  %v2892_v12 = vld [vmem:[%s2412_s3 + $0x1c8] sm:$0xff] }
  0xb0   : > { %v1993_v23 = vpop.eup %1992  ;;  %1635 = vst.msk [vmem:[%s2501_s16 + $0x138] sm:$0xff] %vm1602_vm0, %v1490_v17  ;;  %v1492_v26 = vmul.f32 %v1348_v4, %v340_v9  ;;  %v1066_v29 = vmul.f32 0.7978846, %v922_v15  ;;  %v493_v35 = vmul.f32 0.044715, %v2833_v5  ;;  %v923_v27 = vadd.f32 %v779_v20, %v2807_v36 }
  0xb1   : > { %1636 = vst [vmem:[%s2501_s16 + $0x140] sm:$0xff] %v1491_v3  ;;  %v1349_v37 = vadd.f32 1.0, %v1993_v23  ;;  %v924_v45 = vadd.f32 %v780_v21, %v2815_v43  ;;  %v494_v46 = vmul.f32 0.044715, %v2837_v18  ;;  %v344_v2 = vmul.f32 0.5, %v2784_v58 }
  0xb2   : > { %v1995_v48 = vpop.eup %1994  ;;  %1637 = vst [vmem:[%s2501_s16 + $0x148] sm:$0xff] %v1492_v26  ;;  %2002 = vtanh.f32 %v1066_v29  ;;  %v637_v19 = vmul.f32 %v493_v35, %v2833_v5  ;;  %v495_v57 = vmul.f32 0.044715, %v2843_v22  ;;  %v1067_v31 = vmul.f32 0.7978846, %v923_v27  ;;  %v2905_v35 = vld [vmem:[%s2412_s3 + $0x1d0] sm:$0xff] }
  0xb3   : > { %v1493_v62 = vmul.f32 %v1349_v37, %v341_v56  ;;  %v1350_v0 = vadd.f32 1.0, %v1995_v48  ;;  %v1068_v32 = vmul.f32 0.7978846, %v924_v45  ;;  %v345_v25 = vmul.f32 0.5, %v2790_v30 }
  0xb4   : > { %v781_v33 = vmul.f32 %v637_v19, %v2833_v5  ;;  %v638_v7 = vmul.f32 %v494_v46, %v2837_v18  ;;  %v639_v58 = vmul.f32 %v495_v57, %v2843_v22  ;;  %v346_v6 = vmul.f32 0.5, %v2799_v1 }
  0xb5   : > { %1638 = vst [vmem:[%s2501_s16 + $0x150] sm:$0xff] %v1493_v62  ;;  %v1494_v34 = vmul.f32 %v1350_v0, %v342_v61  ;;  %2004 = vtanh.f32 %v1067_v31  ;;  %v496_v9 = vmul.f32 0.044715, %v2858_v24  ;;  %v347_v44 = vmul.f32 0.5, %v2807_v36  ;;  %v2911_v62 = vld [vmem:[%s2412_s3 + $0x1d8] sm:$0xff] }
  0xb6   : > { %2006 = vtanh.f32 %v1068_v32  ;;  %v925_v30 = vadd.f32 %v781_v33, %v2833_v5  ;;  %v782_v50 = vmul.f32 %v638_v7, %v2837_v18  ;;  %v783_v52 = vmul.f32 %v639_v58, %v2843_v22  ;;  %v2918_v32 = vld [vmem:[%s2412_s3 + $0x1e0] sm:$0xff]  ;;  %v2923_v58 = vld [vmem:[%s2412_s3 + $0x1e8] sm:$0xff] }
  0xb7   : > { %v1997_v51 = vpop.eup %1996  ;;  %1639 = vst [vmem:[%s2501_s16 + $0x158] sm:$0xff] %v1494_v34  ;;  %v640_v10 = vmul.f32 %v496_v9, %v2858_v24  ;;  %v497_v49 = vmul.f32 0.044715, %v2865_v38  ;;  %v498_v1 = vmul.f32 0.044715, %v2868_v42  ;;  %v348_v15 = vmul.f32 0.5, %v2815_v43 }
  0xb8   : > { %v1999_v56 = vpop.eup %1998  ;;  %v1351_v61 = vadd.f32 1.0, %v1997_v51  ;;  %v1069_v11 = vmul.f32 0.7978846, %v925_v30  ;;  %v926_v55 = vadd.f32 %v782_v50, %v2837_v18  ;;  %v927_v47 = vadd.f32 %v783_v52, %v2843_v22 }
  0xb9   : > { %v2001_v13 = vpop.eup %2000  ;;  %v1352_v53 = vadd.f32 1.0, %v1999_v56  ;;  %v784_v36 = vmul.f32 %v640_v10, %v2858_v24  ;;  %v641_v8 = vmul.f32 %v497_v49, %v2865_v38  ;;  %v642_v60 = vmul.f32 %v498_v1, %v2868_v42 }
  0xba   : > { %v1495_v14 = vmul.f32 %v1351_v61, %v343_v28  ;;  %v1353_v16 = vadd.f32 1.0, %v2001_v13  ;;  %2008 = vtanh.f32 %v1069_v11  ;;  %v1070_v39 = vmul.f32 0.7978846, %v926_v55 }
  0xbb   : > { %v1496_v40 = vmul.f32 %v1352_v53, %v344_v2  ;;  %v1071_v41 = vmul.f32 0.7978846, %v927_v47  ;;  %v928_v59 = vadd.f32 %v784_v36, %v2858_v24  ;;  %v785_v54 = vmul.f32 %v641_v8, %v2865_v38 }
  0xbc   : > { %v2003_v17 = vpop.eup %2002  ;;  %1640 = vst [vmem:[%s2501_s16 + $0x160] sm:$0xff] %v1495_v14  ;;  %v1497_v4 = vmul.f32 %v1353_v16, %v345_v25  ;;  %2010 = vtanh.f32 %v1070_v39  ;;  %v786_v3 = vmul.f32 %v642_v60, %v2868_v42  ;;  %v349_v26 = vmul.f32 0.5, %v2833_v5 }
  0xbd   : > { %1641 = vst [vmem:[%s2501_s16 + $0x168] sm:$0xff] %v1496_v40  ;;  %v1354_v20 = vadd.f32 1.0, %v2003_v17  ;;  %2012 = vtanh.f32 %v1071_v41  ;;  %v1072_v21 = vmul.f32 0.7978846, %v928_v59  ;;  %v929_v23 = vadd.f32 %v785_v54, %v2865_v38 }
  0xbe   : > { %1642 = vst [vmem:[%s2501_s16 + $0x170] sm:$0xff] %v1497_v4  ;;  %v930_v28 = vadd.f32 %v786_v3, %v2868_v42  ;;  %v499_v29 = vmul.f32 0.044715, %v2889_v63  ;;  %v500_v43 = vmul.f32 0.044715, %v2892_v12  ;;  %v350_v45 = vmul.f32 0.5, %v2837_v18 }
  0xbf   : > { %v2005_v37 = vpop.eup %2004  ;;  %v1498_v27 = vmul.f32 %v1354_v20, %v346_v6  ;;  %2014 = vtanh.f32 %v1072_v21  ;;  %v1073_v46 = vmul.f32 0.7978846, %v929_v23  ;;  %v351_v31 = vmul.f32 0.5, %v2843_v22  ;;  %v2951_v3 = vld [vmem:[%s2412_s3 + $0x1f8] sm:$0xff] }
  0xc0   : > { %v2007_v48 = vpop.eup %2006  ;;  %v1355_v2 = vadd.f32 1.0, %v2005_v37  ;;  %v1074_v5 = vmul.f32 0.7978846, %v930_v28  ;;  %v643_v19 = vmul.f32 %v499_v29, %v2889_v63  ;;  %v644_v57 = vmul.f32 %v500_v43, %v2892_v12 }
  0xc1   : > { %1643 = vst.msk [vmem:[%s2501_s16 + $0x178] sm:$0xff] %vm1602_vm0, %v1498_v27  ;;  %v1356_v0 = vadd.f32 1.0, %v2007_v48  ;;  %2016 = vtanh.f32 %v1073_v46  ;;  %v501_v18 = vmul.f32 0.044715, %v2905_v35  ;;  %v352_v6 = vmul.f32 0.5, %v2858_v24 }
  0xc2   : > { %v1499_v25 = vmul.f32 %v1355_v2, %v347_v44  ;;  %2018 = vtanh.f32 %v1074_v5  ;;  %v787_v33 = vmul.f32 %v643_v19, %v2889_v63  ;;  %v788_v7 = vmul.f32 %v644_v57, %v2892_v12  ;;  %v2964_v2 = vld [vmem:[%s2412_s3 + $0x208] sm:$0xff] }
  0xc3   : > { %v1500_v34 = vmul.f32 %v1356_v0, %v348_v15  ;;  %v645_v9 = vmul.f32 %v501_v18, %v2905_v35  ;;  %v502_v22 = vmul.f32 0.044715, %v2911_v62  ;;  %v353_v50 = vmul.f32 0.5, %v2865_v38  ;;  %v2969_v0 = vld [vmem:[%s2412_s3 + $0x210] sm:$0xff] }
  0xc4   : > { %v2009_v30 = vpop.eup %2008  ;;  %1644 = vst [vmem:[%s2501_s16 + $0x180] sm:$0xff] %v1499_v25  ;;  %v931_v52 = vadd.f32 %v787_v33, %v2889_v63  ;;  %v932_v51 = vadd.f32 %v788_v7, %v2892_v12  ;;  %v503_v44 = vmul.f32 0.044715, %v2918_v32  ;;  %v504_v1 = vmul.f32 0.044715, %v2923_v58  ;;  %v2975_v7 = vld [vmem:[%s2412_s3 + $0x218] sm:$0xff] }
  0xc5   : > { %1645 = vst [vmem:[%s2501_s16 + $0x188] sm:$0xff] %v1500_v34  ;;  %v1357_v10 = vadd.f32 1.0, %v2009_v30  ;;  %v789_v49 = vmul.f32 %v645_v9, %v2905_v35  ;;  %v646_v24 = vmul.f32 %v502_v22, %v2911_v62  ;;  %v354_v61 = vmul.f32 0.5, %v2868_v42  ;;  %v2944_v42 = vld [vmem:[%s2412_s3 + $0x1f0] sm:$0xff] }
  0xc6   : > { %v2011_v56 = vpop.eup %2010  ;;  %v1075_v38 = vmul.f32 0.7978846, %v931_v52  ;;  %v1076_v11 = vmul.f32 0.7978846, %v932_v51  ;;  %v647_v55 = vmul.f32 %v503_v44, %v2918_v32  ;;  %v648_v16 = vmul.f32 %v504_v1, %v2923_v58 }
  0xc7   : > { %v2013_v47 = vpop.eup %2012  ;;  %v1501_v13 = vmul.f32 %v1357_v10, %v349_v26  ;;  %v1358_v53 = vadd.f32 1.0, %v2011_v56  ;;  %v933_v36 = vadd.f32 %v789_v49, %v2905_v35  ;;  %v790_v8 = vmul.f32 %v646_v24, %v2911_v62 }
  0xc8   : > { %v1359_v60 = vadd.f32 1.0, %v2013_v47  ;;  %2020 = vtanh.f32 %v1075_v38  ;;  %v791_v14 = vmul.f32 %v647_v55, %v2918_v32  ;;  %v792_v15 = vmul.f32 %v648_v16, %v2923_v58 }
  0xc9   : > { %v2015_v39 = vpop.eup %2014  ;;  %1646 = vst [vmem:[%s2501_s16 + $0x190] sm:$0xff] %v1501_v13  ;;  %v1502_v40 = vmul.f32 %v1358_v53, %v350_v45  ;;  %2022 = vtanh.f32 %v1076_v11  ;;  %v1077_v41 = vmul.f32 0.7978846, %v933_v36  ;;  %v934_v59 = vadd.f32 %v790_v8, %v2911_v62  ;;  %v2959_v45 = vld [vmem:[%s2412_s3 + $0x200] sm:$0xff] }
  0xca   : > { %v1503_v54 = vmul.f32 %v1359_v60, %v351_v31  ;;  %v1360_v17 = vadd.f32 1.0, %v2015_v39  ;;  %v935_v4 = vadd.f32 %v791_v14, %v2918_v32  ;;  %v355_v21 = vmul.f32 0.5, %v2889_v63 }
  0xcb   : > { %v2017_v20 = vpop.eup %2016  ;;  %1647 = vst [vmem:[%s2501_s16 + $0x198] sm:$0xff] %v1502_v40  ;;  %2024 = vtanh.f32 %v1077_v41  ;;  %v1078_v23 = vmul.f32 0.7978846, %v934_v59  ;;  %v505_v26 = vmul.f32 0.044715, %v2944_v42  ;;  %v936_v27 = vadd.f32 %v792_v15, %v2923_v58 }
  0xcc   : > { %v2019_v28 = vpop.eup %2018  ;;  %1648 = vst [vmem:[%s2501_s16 + $0x1a0] sm:$0xff] %v1503_v54  ;;  %v1504_v29 = vmul.f32 %v1360_v17, %v352_v6  ;;  %v1361_v43 = vadd.f32 1.0, %v2017_v20  ;;  %v1079_v37 = vmul.f32 0.7978846, %v935_v4  ;;  %v506_v48 = vmul.f32 0.044715, %v2951_v3 }
  0xcd   : > { %v1362_v46 = vadd.f32 1.0, %v2019_v28  ;;  %2026 = vtanh.f32 %v1078_v23  ;;  %v649_v63 = vmul.f32 %v505_v26, %v2944_v42  ;;  %v356_v19 = vmul.f32 0.5, %v2892_v12  ;;  %v3010_v26 = vld [vmem:[%s2412_s3 + $0x228] sm:$0xff]  ;;  %v3013_v28 = vld [vmem:[%s2412_s3 + $0x230] sm:$0xff] }
  0xce   : > { %1649 = vst [vmem:[%s2501_s16 + $0x1a8] sm:$0xff] %v1504_v29  ;;  %v1505_v5 = vmul.f32 %v1361_v43, %v353_v50  ;;  %2028 = vtanh.f32 %v1079_v37  ;;  %v1080_v57 = vmul.f32 0.7978846, %v936_v27  ;;  %v650_v25 = vmul.f32 %v506_v48, %v2951_v3 }
  0xcf   : > { %v1506_v31 = vmul.f32 %v1362_v46, %v354_v61  ;;  %v793_v18 = vmul.f32 %v649_v63, %v2944_v42  ;;  %v507_v33 = vmul.f32 0.044715, %v2959_v45  ;;  %v357_v34 = vmul.f32 0.5, %v2905_v35 }
  0xd0   : > { %1650 = vst [vmem:[%s2501_s16 + $0x1b0] sm:$0xff] %v1505_v5  ;;  %v358_v6 = vmul.f32 0.5, %v2911_v62  ;;  %2030 = vtanh.f32 %v1080_v57  ;;  %v508_v12 = vmul.f32 0.044715, %v2964_v2  ;;  %v794_v22 = vmul.f32 %v650_v25, %v2951_v3 }
  0xd1   : > { %1651 = vst.msk [vmem:[%s2501_s16 + $0x1b8] sm:$0xff] %vm1602_vm0, %v1506_v31  ;;  %v937_v9 = vadd.f32 %v793_v18, %v2944_v42  ;;  %v651_v30 = vmul.f32 %v507_v33, %v2959_v45  ;;  %v509_v50 = vmul.f32 0.044715, %v2969_v0  ;;  %v359_v51 = vmul.f32 0.5, %v2918_v32  ;;  %v3026_v18 = vld [vmem:[%s2412_s3 + $0x240] sm:$0xff] }
  0xd2   : > { %v2021_v52 = vpop.eup %2020  ;;  %v360_v35 = vmul.f32 0.5, %v2923_v58  ;;  %v652_v62 = vmul.f32 %v508_v12, %v2964_v2  ;;  %v510_v44 = vmul.f32 0.044715, %v2975_v7  ;;  %v938_v1 = vadd.f32 %v794_v22, %v2951_v3  ;;  %v2997_v58 = vld [vmem:[%s2412_s3 + $0x220] sm:$0xff]  ;;  %v3036_v22 = vld [vmem:[%s2412_s3 + $0x248] sm:$0xff] }
  0xd3   : > { %v2023_v10 = vpop.eup %2022  ;;  %v1363_v49 = vadd.f32 1.0, %v2021_v52  ;;  %v1081_v24 = vmul.f32 0.7978846, %v937_v9  ;;  %v795_v56 = vmul.f32 %v651_v30, %v2959_v45  ;;  %v653_v11 = vmul.f32 %v509_v50, %v2969_v0  ;;  %v3039_v30 = vld [vmem:[%s2412_s3 + $0x250] sm:$0xff] }
  0xd4   : > { %v1364_v61 = vadd.f32 1.0, %v2023_v10  ;;  %v796_v38 = vmul.f32 %v652_v62, %v2964_v2  ;;  %v654_v32 = vmul.f32 %v510_v44, %v2975_v7  ;;  %v1082_v13 = vmul.f32 0.7978846, %v938_v1 }
  0xd5   : > { %v2025_v55 = vpop.eup %2024  ;;  %v1507_v47 = vmul.f32 %v1363_v49, %v355_v21  ;;  %2032 = vtanh.f32 %v1081_v24  ;;  %v939_v53 = vadd.f32 %v795_v56, %v2959_v45  ;;  %v797_v14 = vmul.f32 %v653_v11, %v2969_v0 }
  0xd6   : > { %v1508_v36 = vmul.f32 %v1364_v61, %v356_v19  ;;  %v1365_v8 = vadd.f32 1.0, %v2025_v55  ;;  %v940_v60 = vadd.f32 %v796_v38, %v2964_v2  ;;  %2034 = vtanh.f32 %v1082_v13  ;;  %v3019_v19 = vld [vmem:[%s2412_s3 + $0x238] sm:$0xff] }
  0xd7   : > { %v2027_v16 = vpop.eup %2026  ;;  %1652 = vst [vmem:[%s2501_s16 + $0x1c0] sm:$0xff] %v1507_v47  ;;  %v1083_v39 = vmul.f32 0.7978846, %v939_v53  ;;  %v798_v40 = vmul.f32 %v654_v32, %v2975_v7  ;;  %v511_v41 = vmul.f32 0.044715, %v2997_v58  ;;  %v941_v15 = vadd.f32 %v797_v14, %v2969_v0 }
  0xd8   : > { %v2029_v59 = vpop.eup %2028  ;;  %1653 = vst [vmem:[%s2501_s16 + $0x1c8] sm:$0xff] %v1508_v36  ;;  %v1509_v54 = vmul.f32 %v1365_v8, %v357_v34  ;;  %v1366_v17 = vadd.f32 1.0, %v2027_v16  ;;  %v1084_v4 = vmul.f32 0.7978846, %v940_v60  ;;  %v361_v37 = vmul.f32 0.5, %v2944_v42 }
  0xd9   : > { %v1367_v20 = vadd.f32 1.0, %v2029_v59  ;;  %2036 = vtanh.f32 %v1083_v39  ;;  %v942_v21 = vadd.f32 %v798_v40, %v2975_v7  ;;  %v655_v23 = vmul.f32 %v511_v41, %v2997_v58 }
  0xda   : > { %v2031_v29 = vpop.eup %2030  ;;  %1654 = vst [vmem:[%s2501_s16 + $0x1d0] sm:$0xff] %v1509_v54  ;;  %v1510_v43 = vmul.f32 %v1366_v17, %v358_v6  ;;  %2038 = vtanh.f32 %v1084_v4  ;;  %v1085_v27 = vmul.f32 0.7978846, %v941_v15  ;;  %v362_v57 = vmul.f32 0.5, %v2951_v3  ;;  %v3066_v15 = vld [vmem:[%s2412_s3 + $0x258] sm:$0xff] }
  0xdb   : > { %v1511_v46 = vmul.f32 %v1367_v20, %v359_v51  ;;  %v1368_v63 = vadd.f32 1.0, %v2031_v29  ;;  %v1086_v48 = vmul.f32 0.7978846, %v942_v21  ;;  %v799_v5 = vmul.f32 %v655_v23, %v2997_v58 }
  0xdc   : > { %1655 = vst [vmem:[%s2501_s16 + $0x1d8] sm:$0xff] %v1510_v43  ;;  %2040 = vtanh.f32 %v1085_v27  ;;  %v512_v31 = vmul.f32 0.044715, %v3010_v26  ;;  %v513_v42 = vmul.f32 0.044715, %v3013_v28  ;;  %v363_v33 = vmul.f32 0.5, %v2959_v45 }
  0xdd   : > { %1656 = vst [vmem:[%s2501_s16 + $0x1e0] sm:$0xff] %v1511_v46  ;;  %v1512_v25 = vmul.f32 %v1368_v63, %v360_v35  ;;  %2042 = vtanh.f32 %v1086_v48  ;;  %v943_v34 = vadd.f32 %v799_v5, %v2997_v58  ;;  %v364_v6 = vmul.f32 0.5, %v2964_v2  ;;  %v3072_v46 = vld [vmem:[%s2412_s3 + $0x260] sm:$0xff]  ;;  %v3075_v63 = vld [vmem:[%s2412_s3 + $0x268] sm:$0xff] }
  0xde   : > { %v656_v12 = vmul.f32 %v512_v31, %v3010_v26  ;;  %v657_v3 = vmul.f32 %v513_v42, %v3013_v28  ;;  %v514_v9 = vmul.f32 0.044715, %v3019_v19  ;;  %v365_v52 = vmul.f32 0.5, %v2969_v0  ;;  %v3081_v31 = vld [vmem:[%s2412_s3 + $0x270] sm:$0xff] }
  0xdf   : > { %v2033_v50 = vpop.eup %2032  ;;  %1657 = vst [vmem:[%s2501_s16 + $0x1e8] sm:$0xff] %v1512_v25  ;;  %v366_v45 = vmul.f32 0.5, %v2975_v7  ;;  %v1087_v51 = vmul.f32 0.7978846, %v943_v34  ;;  %v515_v35 = vmul.f32 0.044715, %v3026_v18 }
  0xe0   : > { %v1369_v2 = vadd.f32 1.0, %v2033_v50  ;;  %v800_v62 = vmul.f32 %v656_v12, %v3010_v26  ;;  %v801_v44 = vmul.f32 %v657_v3, %v3013_v28  ;;  %v658_v10 = vmul.f32 %v514_v9, %v3019_v19  ;;  %v2035_v49 = vpop.eup %2034  ;;  %v3089_v9 = vld [vmem:[%s2412_s3 + $0x278] sm:$0xff] }
  0xe1   : > { %2044 = vtanh.f32 %v1087_v51  ;;  %v659_v24 = vmul.f32 %v515_v35, %v3026_v18  ;;  %v516_v1 = vmul.f32 0.044715, %v3036_v22  ;;  %v517_v0 = vmul.f32 0.044715, %v3039_v30 }
  0xe2   : > { %v1513_v7 = vmul.f32 %v1369_v2, %v361_v37  ;;  %v1370_v56 = vadd.f32 1.0, %v2035_v49  ;;  %v944_v61 = vadd.f32 %v800_v62, %v3010_v26  ;;  %v945_v38 = vadd.f32 %v801_v44, %v3013_v28  ;;  %v3098_v2 = vld [vmem:[%s2412_s3 + $0x280] sm:$0xff] }
  0xe3   : > { %v2037_v11 = vpop.eup %2036  ;;  %v802_v32 = vmul.f32 %v658_v10, %v3019_v19  ;;  %v803_v55 = vmul.f32 %v659_v24, %v3026_v18  ;;  %v660_v47 = vmul.f32 %v516_v1, %v3036_v22  ;;  %v661_v13 = vmul.f32 %v517_v0, %v3039_v30 }
  0xe4   : > { %v2039_v53 = vpop.eup %2038  ;;  %1658 = vst [vmem:[%s2501_s16 + $0x1f0] sm:$0xff] %v1513_v7  ;;  %v1514_v36 = vmul.f32 %v1370_v56, %v362_v57  ;;  %v1371_v8 = vadd.f32 1.0, %v2037_v11  ;;  %v1088_v60 = vmul.f32 0.7978846, %v944_v61  ;;  %v1089_v14 = vmul.f32 0.7978846, %v945_v38 }
  0xe5   : > { %v1372_v16 = vadd.f32 1.0, %v2039_v53  ;;  %v946_v39 = vadd.f32 %v802_v32, %v3019_v19  ;;  %v947_v40 = vadd.f32 %v803_v55, %v3026_v18  ;;  %v804_v41 = vmul.f32 %v660_v47, %v3036_v22 }
  0xe6   : > { %v2041_v59 = vpop.eup %2040  ;;  %1659 = vst.msk [vmem:[%s2501_s16 + $0x1f8] sm:$0xff] %vm1602_vm0, %v1514_v36  ;;  %v1515_v54 = vmul.f32 %v1371_v8, %v363_v33  ;;  %v367_v17 = vmul.f32 0.5, %v2997_v58  ;;  %2046 = vtanh.f32 %v1088_v60  ;;  %v805_v4 = vmul.f32 %v661_v13, %v3039_v30  ;;  %v3118_v8 = vld [vmem:[%s2412_s3 + $0x288] sm:$0xff] }
  0xe7   : > { %v2043_v20 = vpop.eup %2042  ;;  %v1516_v21 = vmul.f32 %v1372_v16, %v364_v6  ;;  %v1373_v23 = vadd.f32 1.0, %v2041_v59  ;;  %2048 = vtanh.f32 %v1089_v14  ;;  %v1090_v29 = vmul.f32 0.7978846, %v946_v39 }
  0xe8   : > { %1660 = vst [vmem:[%s2501_s16 + $0x200] sm:$0xff] %v1515_v54  ;;  %v1374_v43 = vadd.f32 1.0, %v2043_v20  ;;  %v1091_v37 = vmul.f32 0.7978846, %v947_v40  ;;  %v948_v27 = vadd.f32 %v804_v41, %v3036_v22  ;;  %v949_v58 = vadd.f32 %v805_v4, %v3039_v30 }
  0xe9   : > { %1661 = vst [vmem:[%s2501_s16 + $0x208] sm:$0xff] %v1516_v21  ;;  %v1517_v48 = vmul.f32 %v1373_v23, %v365_v52  ;;  %v368_v5 = vmul.f32 0.5, %v3010_v26  ;;  %2050 = vtanh.f32 %v1090_v29  ;;  %v518_v57 = vmul.f32 0.044715, %v3066_v15  ;;  %v3125_v23 = vld [vmem:[%s2412_s3 + $0x290] sm:$0xff] }
  0xea   : > { %v1518_v42 = vmul.f32 %v1374_v43, %v366_v45  ;;  %2052 = vtanh.f32 %v1091_v37  ;;  %v1092_v25 = vmul.f32 0.7978846, %v948_v27  ;;  %v1093_v33 = vmul.f32 0.7978846, %v949_v58  ;;  %v3130_v58 = vld [vmem:[%s2412_s3 + $0x298] sm:$0xff] }
  0xeb   : > { %v2045_v34 = vpop.eup %2044  ;;  %1662 = vst [vmem:[%s2501_s16 + $0x210] sm:$0xff] %v1517_v48  ;;  %v369_v6 = vmul.f32 0.5, %v3013_v28  ;;  %v662_v12 = vmul.f32 %v518_v57, %v3066_v15  ;;  %v519_v3 = vmul.f32 0.044715, %v3072_v46  ;;  %v520_v26 = vmul.f32 0.044715, %v3075_v63 }
  0xec   : > { %1663 = vst [vmem:[%s2501_s16 + $0x218] sm:$0xff] %v1518_v42  ;;  %v1375_v50 = vadd.f32 1.0, %v2045_v34  ;;  %v370_v52 = vmul.f32 0.5, %v3019_v19  ;;  %2054 = vtanh.f32 %v1092_v25  ;;  %v521_v45 = vmul.f32 0.044715, %v3081_v31  ;;  %v3138_v34 = vld [vmem:[%s2412_s3 + $0x2a0] sm:$0xff] }
  0xed   : > { %2056 = vtanh.f32 %v1093_v33  ;;  %v806_v51 = vmul.f32 %v662_v12, %v3066_v15  ;;  %v663_v28 = vmul.f32 %v519_v3, %v3072_v46  ;;  %v664_v35 = vmul.f32 %v520_v26, %v3075_v63 }
  0xee   : > { %v1519_v62 = vmul.f32 %v1375_v50, %v367_v17  ;;  %v371_v44 = vmul.f32 0.5, %v3026_v18  ;;  %v665_v10 = vmul.f32 %v521_v45, %v3081_v31  ;;  %v522_v19 = vmul.f32 0.044715, %v3089_v9  ;;  %v3144_v50 = vld [vmem:[%s2412_s3 + $0x2a8] sm:$0xff] }
  0xef   : > { %v372_v49 = vmul.f32 0.5, %v3036_v22  ;;  %v950_v24 = vadd.f32 %v806_v51, %v3066_v15  ;;  %v807_v1 = vmul.f32 %v663_v28, %v3072_v46  ;;  %v808_v0 = vmul.f32 %v664_v35, %v3075_v63  ;;  %v3150_v35 = vld [vmem:[%s2412_s3 + $0x2b0] sm:$0xff] }
  0xf0   : > { %v2047_v7 = vpop.eup %2046  ;;  %1664 = vst [vmem:[%s2501_s16 + $0x220] sm:$0xff] %v1519_v62  ;;  %v373_v56 = vmul.f32 0.5, %v3039_v30  ;;  %v809_v61 = vmul.f32 %v665_v10, %v3081_v31  ;;  %v666_v18 = vmul.f32 %v522_v19, %v3089_v9  ;;  %v523_v38 = vmul.f32 0.044715, %v3098_v2 }
  0xf1   : > { %v2049_v11 = vpop.eup %2048  ;;  %v1376_v32 = vadd.f32 1.0, %v2047_v7  ;;  %v1094_v22 = vmul.f32 0.7978846, %v950_v24  ;;  %v951_v55 = vadd.f32 %v807_v1, %v3072_v46  ;;  %v952_v47 = vadd.f32 %v808_v0, %v3075_v63  ;;  %v3162_v24 = vld [vmem:[%s2412_s3 + $0x2b8] sm:$0xff] }
  0xf2   : > { %v1377_v13 = vadd.f32 1.0, %v2049_v11  ;;  %v953_v53 = vadd.f32 %v809_v61, %v3081_v31  ;;  %v810_v36 = vmul.f32 %v666_v18, %v3089_v9  ;;  %v667_v30 = vmul.f32 %v523_v38, %v3098_v2 }
  0xf3   : > { %v2051_v60 = vpop.eup %2050  ;;  %v1520_v14 = vmul.f32 %v1376_v32, %v368_v5  ;;  %2058 = vtanh.f32 %v1094_v22  ;;  %v1095_v16 = vmul.f32 0.7978846, %v951_v55  ;;  %v1096_v39 = vmul.f32 0.7978846, %v952_v47 }
  0xf4   : > { %v2053_v40 = vpop.eup %2052  ;;  %v1521_v41 = vmul.f32 %v1377_v13, %v369_v6  ;;  %v1378_v59 = vadd.f32 1.0, %v2051_v60  ;;  %v1097_v54 = vmul.f32 0.7978846, %v953_v53  ;;  %v954_v17 = vadd.f32 %v810_v36, %v3089_v9 }
  0xf5   : > { %1665 = vst [vmem:[%s2501_s16 + $0x228] sm:$0xff] %v1520_v14  ;;  %v1379_v4 = vadd.f32 1.0, %v2053_v40  ;;  %2060 = vtanh.f32 %v1095_v16  ;;  %v811_v20 = vmul.f32 %v667_v30, %v3098_v2  ;;  %v524_v21 = vmul.f32 0.044715, %v3118_v8 }
  0xf6   : > { %v2055_v29 = vpop.eup %2054  ;;  %1666 = vst [vmem:[%s2501_s16 + $0x230] sm:$0xff] %v1521_v41  ;;  %v1522_v43 = vmul.f32 %v1378_v59, %v370_v52  ;;  %v374_v37 = vmul.f32 0.5, %v3066_v15  ;;  %2062 = vtanh.f32 %v1096_v39  ;;  %v1098_v27 = vmul.f32 0.7978846, %v954_v17  ;;  %v3179_v17 = vld [vmem:[%s2412_s3 + $0x2c0] sm:$0xff] }
  0xf7   : > { %v2057_v48 = vpop.eup %2056  ;;  %v1523_v5 = vmul.f32 %v1379_v4, %v371_v44  ;;  %v1380_v57 = vadd.f32 1.0, %v2055_v29  ;;  %2064 = vtanh.f32 %v1097_v54  ;;  %v955_v42 = vadd.f32 %v811_v20, %v3098_v2 }
  0xf8   : > { %1667 = vst.msk [vmem:[%s2501_s16 + $0x238] sm:$0xff] %vm1602_vm0, %v1522_v43  ;;  %v1381_v25 = vadd.f32 1.0, %v2057_v48  ;;  %2066 = vtanh.f32 %v1098_v27  ;;  %v668_v33 = vmul.f32 %v524_v21, %v3118_v8  ;;  %v525_v15 = vmul.f32 0.044715, %v3125_v23  ;;  %v3186_v48 = vld [vmem:[%s2412_s3 + $0x2c8] sm:$0xff] }
  0xf9   : > { %1668 = vst [vmem:[%s2501_s16 + $0x240] sm:$0xff] %v1523_v5  ;;  %v1524_v6 = vmul.f32 %v1380_v57, %v372_v49  ;;  %v375_v12 = vmul.f32 0.5, %v3072_v46  ;;  %v1099_v3 = vmul.f32 0.7978846, %v955_v42  ;;  %v526_v26 = vmul.f32 0.044715, %v3130_v58 }
  0xfa   : > { %v1525_v52 = vmul.f32 %v1381_v25, %v373_v56  ;;  %v376_v45 = vmul.f32 0.5, %v3075_v63  ;;  %v812_v51 = vmul.f32 %v668_v33, %v3118_v8  ;;  %v669_v28 = vmul.f32 %v525_v15, %v3125_v23  ;;  %v3191_v25 = vld [vmem:[%s2412_s3 + $0x2d0] sm:$0xff] }
  0xfb   : > { %1669 = vst [vmem:[%s2501_s16 + $0x248] sm:$0xff] %v1524_v6  ;;  %v377_v62 = vmul.f32 0.5, %v3081_v31  ;;  %2068 = vtanh.f32 %v1099_v3  ;;  %v670_v46 = vmul.f32 %v526_v26, %v3130_v58  ;;  %v527_v44 = vmul.f32 0.044715, %v3138_v34 }
  0xfc   : > { %1670 = vst [vmem:[%s2501_s16 + $0x250] sm:$0xff] %v1525_v52  ;;  %v378_v10 = vmul.f32 0.5, %v3089_v9  ;;  %v956_v19 = vadd.f32 %v812_v51, %v3118_v8  ;;  %v813_v63 = vmul.f32 %v669_v28, %v3125_v23  ;;  %v528_v49 = vmul.f32 0.044715, %v3144_v50  ;;  %v3202_v51 = vld [vmem:[%s2412_s3 + $0x2d8] sm:$0xff] }
  0xfd   : > { %v2059_v1 = vpop.eup %2058  ;;  %v379_v0 = vmul.f32 0.5, %v3098_v2  ;;  %v814_v31 = vmul.f32 %v670_v46, %v3130_v58  ;;  %v671_v7 = vmul.f32 %v527_v44, %v3138_v34  ;;  %v529_v56 = vmul.f32 0.044715, %v3150_v35  ;;  %v3207_v44 = vld [vmem:[%s2412_s3 + $0x2e0] sm:$0xff] }
  0xfe   : > { %v1382_v61 = vadd.f32 1.0, %v2059_v1  ;;  %v1100_v18 = vmul.f32 0.7978846, %v956_v19  ;;  %v957_v9 = vadd.f32 %v813_v63, %v3125_v23  ;;  %v672_v38 = vmul.f32 %v528_v49, %v3144_v50 }
  0xff   : > { %v2061_v11 = vpop.eup %2060  ;;  %v958_v32 = vadd.f32 %v814_v31, %v3130_v58  ;;  %v815_v22 = vmul.f32 %v671_v7, %v3138_v34  ;;  %v673_v2 = vmul.f32 %v529_v56, %v3150_v35  ;;  %v530_v55 = vmul.f32 0.044715, %v3162_v24 }
 0x100   : > { %v2063_v47 = vpop.eup %2062  ;;  %v1526_v13 = vmul.f32 %v1382_v61, %v374_v37  ;;  %v1383_v53 = vadd.f32 1.0, %v2061_v11  ;;  %2070 = vtanh.f32 %v1100_v18  ;;  %v1101_v36 = vmul.f32 0.7978846, %v957_v9 }
 0x101   : > { %v2065_v30 = vpop.eup %2064  ;;  %v1384_v60 = vadd.f32 1.0, %v2063_v47  ;;  %v1102_v14 = vmul.f32 0.7978846, %v958_v32  ;;  %v959_v16 = vadd.f32 %v815_v22, %v3138_v34  ;;  %v816_v39 = vmul.f32 %v672_v38, %v3144_v50  ;;  %v3223_v38 = vld [vmem:[%s2412_s3 + $0x2e8] sm:$0xff] }
 0x102   : > { %v2067_v40 = vpop.eup %2066  ;;  %1671 = vst [vmem:[%s2501_s16 + $0x258] sm:$0xff] %v1526_v13  ;;  %v1527_v41 = vmul.f32 %v1383_v53, %v375_v12  ;;  %v1385_v59 = vadd.f32 1.0, %v2065_v30  ;;  %2072 = vtanh.f32 %v1101_v36  ;;  %v817_v54 = vmul.f32 %v673_v2, %v3150_v35 }
 0x103   : > { %v1528_v4 = vmul.f32 %v1384_v60, %v376_v45  ;;  %v1386_v20 = vadd.f32 1.0, %v2067_v40  ;;  %2074 = vtanh.f32 %v1102_v14  ;;  %v1103_v21 = vmul.f32 0.7978846, %v959_v16  ;;  %v3232_v16 = vld [vmem:[%s2412_s3 + $0x2f0] sm:$0xff] }
 0x104   : > { %1672 = vst [vmem:[%s2501_s16 + $0x260] sm:$0xff] %v1527_v41  ;;  %v1529_v29 = vmul.f32 %v1385_v59, %v377_v62  ;;  %v960_v43 = vadd.f32 %v816_v39, %v3144_v50  ;;  %v961_v37 = vadd.f32 %v817_v54, %v3150_v35  ;;  %v674_v27 = vmul.f32 %v530_v55, %v3162_v24 }
 0x105   : > { %v2069_v5 = vpop.eup %2068  ;;  %1673 = vst [vmem:[%s2501_s16 + $0x268] sm:$0xff] %v1528_v4  ;;  %v1530_v57 = vmul.f32 %v1386_v20, %v378_v10  ;;  %2076 = vtanh.f32 %v1103_v21  ;;  %v531_v42 = vmul.f32 0.044715, %v3179_v17  ;;  %v380_v3 = vmul.f32 0.5, %v3118_v8  ;;  %v3240_v21 = vld [vmem:[%s2412_s3 + $0x2f8] sm:$0xff] }
 0x106   : > { %1674 = vst [vmem:[%s2501_s16 + $0x270] sm:$0xff] %v1529_v29  ;;  %v1387_v33 = vadd.f32 1.0, %v2069_v5  ;;  %v1104_v15 = vmul.f32 0.7978846, %v960_v43  ;;  %v1105_v6 = vmul.f32 0.7978846, %v961_v37  ;;  %v818_v12 = vmul.f32 %v674_v27, %v3162_v24 }
 0x107   : > { %1675 = vst.msk [vmem:[%s2501_s16 + $0x278] sm:$0xff] %vm1602_vm0, %v1530_v57  ;;  %v381_v26 = vmul.f32 0.5, %v3125_v23  ;;  %v675_v52 = vmul.f32 %v531_v42, %v3179_v17  ;;  %v532_v45 = vmul.f32 0.044715, %v3186_v48  ;;  %v533_v46 = vmul.f32 0.044715, %v3191_v25 }
 0x108   : > { %v1531_v28 = vmul.f32 %v1387_v33, %v379_v0  ;;  %2078 = vtanh.f32 %v1104_v15  ;;  %v962_v62 = vadd.f32 %v818_v12, %v3162_v24  ;;  %v382_v10 = vmul.f32 0.5, %v3130_v58  ;;  %v3248_v15 = vld [vmem:[%s2412_s3 + $0x300] sm:$0xff] }
 0x109   : > { %2080 = vtanh.f32 %v1105_v6  ;;  %v819_v8 = vmul.f32 %v675_v52, %v3179_v17  ;;  %v676_v23 = vmul.f32 %v532_v45, %v3186_v48  ;;  %v383_v63 = vmul.f32 0.5, %v3138_v34 }
 0x10a   : > { %v2071_v19 = vpop.eup %2070  ;;  %1676 = vst [vmem:[%s2501_s16 + $0x280] sm:$0xff] %v1531_v28  ;;  %v1106_v49 = vmul.f32 0.7978846, %v962_v62  ;;  %v677_v1 = vmul.f32 %v533_v46, %v3191_v25  ;;  %v534_v0 = vmul.f32 0.044715, %v3202_v51  ;;  %v384_v18 = vmul.f32 0.5, %v3144_v50 }
 0x10b   : > { %v1388_v31 = vadd.f32 1.0, %v2071_v19  ;;  %v963_v7 = vadd.f32 %v819_v8, %v3179_v17  ;;  %v820_v58 = vmul.f32 %v676_v23, %v3186_v48  ;;  %v535_v56 = vmul.f32 0.044715, %v3207_v44  ;;  %v3256_v28 = vld [vmem:[%s2412_s3 + $0x308] sm:$0xff]  ;;  %v3262_v19 = vld [vmem:[%s2412_s3 + $0x310] sm:$0xff] }
 0x10c   : > { %v2073_v61 = vpop.eup %2072  ;;  %2082 = vtanh.f32 %v1106_v49  ;;  %v821_v9 = vmul.f32 %v677_v1, %v3191_v25  ;;  %v678_v34 = vmul.f32 %v534_v0, %v3202_v51  ;;  %v536_v14 = vmul.f32 0.044715, %v3223_v38 }
 0x10d   : > { %v2075_v11 = vpop.eup %2074  ;;  %v1532_v32 = vmul.f32 %v1388_v31, %v380_v3  ;;  %v1389_v22 = vadd.f32 1.0, %v2073_v61  ;;  %v1107_v2 = vmul.f32 0.7978846, %v963_v7  ;;  %v964_v55 = vadd.f32 %v820_v58, %v3186_v48  ;;  %v3272_v58 = vld [vmem:[%s2412_s3 + $0x318] sm:$0xff] }
 0x10e   : > { %v1390_v47 = vadd.f32 1.0, %v2075_v11  ;;  %v965_v13 = vadd.f32 %v821_v9, %v3191_v25  ;;  %v822_v50 = vmul.f32 %v678_v34, %v3202_v51  ;;  %v679_v53 = vmul.f32 %v535_v56, %v3207_v44 }
 0x10f   : > { %v2077_v36 = vpop.eup %2076  ;;  %1677 = vst [vmem:[%s2501_s16 + $0x288] sm:$0xff] %v1532_v32  ;;  %v1533_v30 = vmul.f32 %v1389_v22, %v381_v26  ;;  %2084 = vtanh.f32 %v1107_v2  ;;  %v1108_v60 = vmul.f32 0.7978846, %v964_v55  ;;  %v385_v54 = vmul.f32 0.5, %v3150_v35 }
 0x110   : > { %v1534_v39 = vmul.f32 %v1390_v47, %v382_v10  ;;  %v1391_v40 = vadd.f32 1.0, %v2077_v36  ;;  %v1109_v41 = vmul.f32 0.7978846, %v965_v13  ;;  %v966_v59 = vadd.f32 %v822_v50, %v3202_v51 }
 0x111   : > { %1678 = vst [vmem:[%s2501_s16 + $0x290] sm:$0xff] %v1533_v30  ;;  %2086 = vtanh.f32 %v1108_v60  ;;  %v823_v4 = vmul.f32 %v679_v53, %v3207_v44  ;;  %v680_v20 = vmul.f32 %v536_v14, %v3223_v38  ;;  %v537_v27 = vmul.f32 0.044715, %v3232_v16 }
 0x112   : > { %v2079_v29 = vpop.eup %2078  ;;  %1679 = vst [vmem:[%s2501_s16 + $0x298] sm:$0xff] %v1534_v39  ;;  %v1535_v43 = vmul.f32 %v1391_v40, %v383_v63  ;;  %2088 = vtanh.f32 %v1109_v41  ;;  %v1110_v37 = vmul.f32 0.7978846, %v966_v59  ;;  %v386_v35 = vmul.f32 0.5, %v3162_v24  ;;  %v3288_v39 = vld [vmem:[%s2412_s3 + $0x320] sm:$0xff] }
 0x113   : > { %v2081_v5 = vpop.eup %2080  ;;  %v1392_v57 = vadd.f32 1.0, %v2079_v29  ;;  %v967_v42 = vadd.f32 %v823_v4, %v3207_v44  ;;  %v824_v33 = vmul.f32 %v680_v20, %v3223_v38  ;;  %v681_v12 = vmul.f32 %v537_v27, %v3232_v16  ;;  %v3294_v4 = vld [vmem:[%s2412_s3 + $0x328] sm:$0xff] }
 0x114   : > { %1680 = vst [vmem:[%s2501_s16 + $0x2a0] sm:$0xff] %v1535_v43  ;;  %v1393_v6 = vadd.f32 1.0, %v2081_v5  ;;  %2090 = vtanh.f32 %v1110_v37  ;;  %v538_v3 = vmul.f32 0.044715, %v3240_v21  ;;  %v387_v52 = vmul.f32 0.5, %v3179_v17 }
 0x115   : > { %v1536_v26 = vmul.f32 %v1392_v57, %v384_v18  ;;  %v1111_v24 = vmul.f32 0.7978846, %v967_v42  ;;  %v968_v45 = vadd.f32 %v824_v33, %v3223_v38  ;;  %v825_v10 = vmul.f32 %v681_v12, %v3232_v16 }
 0x116   : > { %v2083_v62 = vpop.eup %2082  ;;  %v1537_v46 = vmul.f32 %v1393_v6, %v385_v54  ;;  %v682_v8 = vmul.f32 %v538_v3, %v3240_v21  ;;  %v539_v23 = vmul.f32 0.044715, %v3248_v15  ;;  %v388_v17 = vmul.f32 0.5, %v3186_v48 }
 0x117   : > { %1681 = vst [vmem:[%s2501_s16 + $0x2a8] sm:$0xff] %v1536_v26  ;;  %v1394_v63 = vadd.f32 1.0, %v2083_v62  ;;  %2092 = vtanh.f32 %v1111_v24  ;;  %v1112_v49 = vmul.f32 0.7978846, %v968_v45  ;;  %v969_v1 = vadd.f32 %v825_v10, %v3232_v16  ;;  %v3314_v10 = vld [vmem:[%s2412_s3 + $0x338] sm:$0xff] }
 0x118   : > { %1682 = vst [vmem:[%s2501_s16 + $0x2b0] sm:$0xff] %v1537_v46  ;;  %v826_v0 = vmul.f32 %v682_v8, %v3240_v21  ;;  %v683_v31 = vmul.f32 %v539_v23, %v3248_v15  ;;  %v540_v7 = vmul.f32 0.044715, %v3256_v28  ;;  %v389_v18 = vmul.f32 0.5, %v3191_v25 }
 0x119   : > { %v2085_v56 = vpop.eup %2084  ;;  %v1538_v61 = vmul.f32 %v1394_v63, %v386_v35  ;;  %2094 = vtanh.f32 %v1112_v49  ;;  %v541_v48 = vmul.f32 0.044715, %v3262_v19  ;;  %v1113_v34 = vmul.f32 0.7978846, %v969_v1  ;;  %v3303_v35 = vld [vmem:[%s2412_s3 + $0x330] sm:$0xff] }
 0x11a   : > { %v1395_v9 = vadd.f32 1.0, %v2085_v56  ;;  %v970_v11 = vadd.f32 %v826_v0, %v3240_v21  ;;  %v827_v32 = vmul.f32 %v683_v31, %v3248_v15  ;;  %v390_v2 = vmul.f32 0.5, %v3202_v51  ;;  %v3321_v0 = vld [vmem:[%s2412_s3 + $0x340] sm:$0xff]  ;;  %v3324_v31 = vld [vmem:[%s2412_s3 + $0x348] sm:$0xff] }
 0x11b   : > { %v2087_v22 = vpop.eup %2086  ;;  %1683 = vst.msk [vmem:[%s2501_s16 + $0x2b8] sm:$0xff] %vm1602_vm0, %v1538_v61  ;;  %v684_v55 = vmul.f32 %v540_v7, %v3256_v28  ;;  %v685_v25 = vmul.f32 %v541_v48, %v3262_v19  ;;  %v542_v47 = vmul.f32 0.044715, %v3272_v58  ;;  %2096 = vtanh.f32 %v1113_v34 }
 0x11c   : > { %v2089_v13 = vpop.eup %2088  ;;  %v1539_v50 = vmul.f32 %v1395_v9, %v387_v52  ;;  %v1396_v53 = vadd.f32 1.0, %v2087_v22  ;;  %v1114_v36 = vmul.f32 0.7978846, %v970_v11  ;;  %v971_v60 = vadd.f32 %v827_v32, %v3248_v15 }
 0x11d   : > { %v1397_v30 = vadd.f32 1.0, %v2089_v13  ;;  %v828_v14 = vmul.f32 %v684_v55, %v3256_v28  ;;  %v829_v51 = vmul.f32 %v685_v25, %v3262_v19  ;;  %v391_v59 = vmul.f32 0.5, %v3207_v44  ;;  %v3338_v55 = vld [vmem:[%s2412_s3 + $0x350] sm:$0xff] }
 0x11e   : > { %v2091_v40 = vpop.eup %2090  ;;  %1684 = vst [vmem:[%s2501_s16 + $0x2c0] sm:$0xff] %v1539_v50  ;;  %v1540_v41 = vmul.f32 %v1396_v53, %v388_v17  ;;  %2098 = vtanh.f32 %v1114_v36  ;;  %v686_v54 = vmul.f32 %v542_v47, %v3272_v58  ;;  %v1115_v43 = vmul.f32 0.7978846, %v971_v60 }
 0x11f   : > { %v1541_v20 = vmul.f32 %v1397_v30, %v389_v18  ;;  %v1398_v29 = vadd.f32 1.0, %v2091_v40  ;;  %v972_v37 = vadd.f32 %v828_v14, %v3256_v28  ;;  %v392_v27 = vmul.f32 0.5, %v3223_v38 }
 0x120   : > { %1685 = vst [vmem:[%s2501_s16 + $0x2c8] sm:$0xff] %v1540_v41  ;;  %v973_v5 = vadd.f32 %v829_v51, %v3262_v19  ;;  %v830_v57 = vmul.f32 %v686_v54, %v3272_v58  ;;  %v543_v44 = vmul.f32 0.044715, %v3288_v39  ;;  %2100 = vtanh.f32 %v1115_v43 }
 0x121   : > { %v2093_v42 = vpop.eup %2092  ;;  %1686 = vst [vmem:[%s2501_s16 + $0x2d0] sm:$0xff] %v1541_v20  ;;  %v1542_v33 = vmul.f32 %v1398_v29, %v390_v2  ;;  %v1116_v6 = vmul.f32 0.7978846, %v972_v37  ;;  %v544_v12 = vmul.f32 0.044715, %v3294_v4  ;;  %v393_v45 = vmul.f32 0.5, %v3232_v16 }
 0x122   : > { %v1399_v3 = vadd.f32 1.0, %v2093_v42  ;;  %v1117_v26 = vmul.f32 0.7978846, %v973_v5  ;;  %v974_v38 = vadd.f32 %v830_v57, %v3272_v58  ;;  %v687_v52 = vmul.f32 %v543_v44, %v3288_v39 }
 0x123   : > { %v2095_v24 = vpop.eup %2094  ;;  %1687 = vst [vmem:[%s2501_s16 + $0x2d8] sm:$0xff] %v1542_v33  ;;  %2102 = vtanh.f32 %v1116_v6  ;;  %v688_v62 = vmul.f32 %v544_v12, %v3294_v4  ;;  %v545_v46 = vmul.f32 0.044715, %v3303_v35  ;;  %v394_v17 = vmul.f32 0.5, %v3240_v21 }
 0x124   : > { %v1543_v8 = vmul.f32 %v1399_v3, %v391_v59  ;;  %v1400_v23 = vadd.f32 1.0, %v2095_v24  ;;  %2104 = vtanh.f32 %v1117_v26  ;;  %v1118_v63 = vmul.f32 0.7978846, %v974_v38  ;;  %v3361_v3 = vld [vmem:[%s2412_s3 + $0x360] sm:$0xff] }
 0x125   : > { %v831_v49 = vmul.f32 %v687_v52, %v3288_v39  ;;  %v832_v1 = vmul.f32 %v688_v62, %v3294_v4  ;;  %v689_v16 = vmul.f32 %v545_v46, %v3303_v35  ;;  %v2097_v7 = vpop.eup %2096  ;;  %v395_v61 = vmul.f32 0.5, %v3248_v15 }
 0x126   : > { %1688 = vst [vmem:[%s2501_s16 + $0x2e0] sm:$0xff] %v1543_v8  ;;  %v1544_v56 = vmul.f32 %v1400_v23, %v392_v27  ;;  %2106 = vtanh.f32 %v1118_v63  ;;  %v546_v21 = vmul.f32 0.044715, %v3314_v10  ;;  %v1401_v18 = vadd.f32 1.0, %v2097_v7  ;;  %v3355_v27 = vld [vmem:[%s2412_s3 + $0x358] sm:$0xff] }
 0x127   : > { %v975_v48 = vadd.f32 %v831_v49, %v3288_v39  ;;  %v976_v9 = vadd.f32 %v832_v1, %v3294_v4  ;;  %v833_v34 = vmul.f32 %v689_v16, %v3303_v35  ;;  %v396_v32 = vmul.f32 0.5, %v3256_v28  ;;  %v3378_v16 = vld [vmem:[%s2412_s3 + $0x378] sm:$0xff] }
 0x128   : > { %v2099_v11 = vpop.eup %2098  ;;  %1689 = vst [vmem:[%s2501_s16 + $0x2e8] sm:$0xff] %v1544_v56  ;;  %v690_v22 = vmul.f32 %v546_v21, %v3314_v10  ;;  %v547_v2 = vmul.f32 0.044715, %v3321_v0  ;;  %v548_v15 = vmul.f32 0.044715, %v3324_v31  ;;  %v1545_v25 = vmul.f32 %v1401_v18, %v393_v45  ;;  %v3367_v45 = vld [vmem:[%s2412_s3 + $0x368] sm:$0xff] }
 0x129   : > { %v1402_v47 = vadd.f32 1.0, %v2099_v11  ;;  %v1119_v13 = vmul.f32 0.7978846, %v975_v48  ;;  %v1120_v50 = vmul.f32 0.7978846, %v976_v9  ;;  %v977_v53 = vadd.f32 %v833_v34, %v3303_v35 }
 0x12a   : > { %v834_v36 = vmul.f32 %v690_v22, %v3314_v10  ;;  %v691_v30 = vmul.f32 %v547_v2, %v3321_v0  ;;  %v692_v28 = vmul.f32 %v548_v15, %v3324_v31  ;;  %v2101_v60 = vpop.eup %2100  ;;  %1690 = vst [vmem:[%s2501_s16 + $0x2f0] sm:$0xff] %v1545_v25  ;;  %v397_v51 = vmul.f32 0.5, %v3262_v19 }
 0x12b   : > { %v1546_v14 = vmul.f32 %v1402_v47, %v394_v17  ;;  %2108 = vtanh.f32 %v1119_v13  ;;  %v549_v40 = vmul.f32 0.044715, %v3338_v55  ;;  %v1403_v41 = vadd.f32 1.0, %v2101_v60 }
 0x12c   : > { %2110 = vtanh.f32 %v1120_v50  ;;  %v1121_v59 = vmul.f32 0.7978846, %v977_v53  ;;  %v978_v54 = vadd.f32 %v834_v36, %v3314_v10  ;;  %v398_v29 = vmul.f32 0.5, %v3272_v58  ;;  %v3396_v50 = vld [vmem:[%s2412_s3 + $0x380] sm:$0xff] }
 0x12d   : > { %v2103_v20 = vpop.eup %2102  ;;  %1691 = vst.msk [vmem:[%s2501_s16 + $0x2f8] sm:$0xff] %vm1602_vm0, %v1546_v14  ;;  %v835_v43 = vmul.f32 %v691_v30, %v3321_v0  ;;  %v836_v37 = vmul.f32 %v692_v28, %v3324_v31  ;;  %v693_v19 = vmul.f32 %v549_v40, %v3338_v55  ;;  %v1547_v57 = vmul.f32 %v1403_v41, %v395_v61 }
 0x12e   : > { %v2105_v5 = vpop.eup %2104  ;;  %v1404_v44 = vadd.f32 1.0, %v2103_v20  ;;  %2112 = vtanh.f32 %v1121_v59  ;;  %v1122_v42 = vmul.f32 0.7978846, %v978_v54  ;;  %v399_v52 = vmul.f32 0.5, %v3288_v39  ;;  %v3375_v39 = vld [vmem:[%s2412_s3 + $0x370] sm:$0xff] }
 0x12f   : > { %v1405_v33 = vadd.f32 1.0, %v2105_v5  ;;  %v979_v6 = vadd.f32 %v835_v43, %v3321_v0  ;;  %v980_v58 = vadd.f32 %v836_v37, %v3324_v31  ;;  %v837_v12 = vmul.f32 %v693_v19, %v3338_v55  ;;  %1692 = vst [vmem:[%s2501_s16 + $0x300] sm:$0xff] %v1547_v57 }
 0x130   : > { %v2107_v26 = vpop.eup %2106  ;;  %v1548_v38 = vmul.f32 %v1404_v44, %v396_v32  ;;  %2114 = vtanh.f32 %v1122_v42  ;;  %v550_v24 = vmul.f32 0.044715, %v3355_v27  ;;  %v400_v63 = vmul.f32 0.5, %v3294_v4 }
 0x131   : > { %v1549_v62 = vmul.f32 %v1405_v33, %v397_v51  ;;  %v1406_v46 = vadd.f32 1.0, %v2107_v26  ;;  %v1123_v8 = vmul.f32 0.7978846, %v979_v6  ;;  %v1124_v23 = vmul.f32 0.7978846, %v980_v58  ;;  %v3414_v33 = vld [vmem:[%s2412_s3 + $0x390] sm:$0xff] }
 0x132   : > { %1693 = vst [vmem:[%s2501_s16 + $0x308] sm:$0xff] %v1548_v38  ;;  %v981_v17 = vadd.f32 %v837_v12, %v3338_v55  ;;  %v694_v49 = vmul.f32 %v550_v24, %v3355_v27  ;;  %v551_v1 = vmul.f32 0.044715, %v3361_v3  ;;  %v401_v56 = vmul.f32 0.5, %v3303_v35 }
 0x133   : > { %1694 = vst [vmem:[%s2501_s16 + $0x310] sm:$0xff] %v1549_v62  ;;  %v1550_v7 = vmul.f32 %v1406_v46, %v398_v29  ;;  %2116 = vtanh.f32 %v1123_v8  ;;  %v552_v61 = vmul.f32 0.044715, %v3367_v45  ;;  %v402_v9 = vmul.f32 0.5, %v3314_v10 }
 0x134   : > { %2118 = vtanh.f32 %v1124_v23  ;;  %v1125_v4 = vmul.f32 0.7978846, %v981_v17  ;;  %v838_v21 = vmul.f32 %v694_v49, %v3355_v27  ;;  %v695_v18 = vmul.f32 %v551_v1, %v3361_v3 }
 0x135   : > { %v2109_v48 = vpop.eup %2108  ;;  %1695 = vst [vmem:[%s2501_s16 + $0x318] sm:$0xff] %v1550_v7  ;;  %v696_v34 = vmul.f32 %v552_v61, %v3367_v45  ;;  %v553_v11 = vmul.f32 0.044715, %v3375_v39  ;;  %v554_v35 = vmul.f32 0.044715, %v3378_v16  ;;  %v403_v30 = vmul.f32 0.5, %v3321_v0 }
 0x136   : > { %v2111_v32 = vpop.eup %2110  ;;  %v1407_v22 = vadd.f32 1.0, %v2109_v48  ;;  %2120 = vtanh.f32 %v1125_v4  ;;  %v982_v2 = vadd.f32 %v838_v21, %v3355_v27  ;;  %v839_v15 = vmul.f32 %v695_v18, %v3361_v3  ;;  %v3406_v0 = vld [vmem:[%s2412_s3 + $0x388] sm:$0xff]  ;;  %v3430_v7 = vld [vmem:[%s2412_s3 + $0x3a0] sm:$0xff] }
 0x137   : > { %v1408_v25 = vadd.f32 1.0, %v2111_v32  ;;  %v840_v47 = vmul.f32 %v696_v34, %v3367_v45  ;;  %v697_v13 = vmul.f32 %v553_v11, %v3375_v39  ;;  %v698_v10 = vmul.f32 %v554_v35, %v3378_v16  ;;  %v3435_v18 = vld [vmem:[%s2412_s3 + $0x3a8] sm:$0xff] }
 0x138   : > { %v2113_v53 = vpop.eup %2112  ;;  %v1551_v36 = vmul.f32 %v1407_v22, %v399_v52  ;;  %v1126_v28 = vmul.f32 0.7978846, %v982_v2  ;;  %v983_v60 = vadd.f32 %v839_v15, %v3361_v3  ;;  %v555_v29 = vmul.f32 0.044715, %v3396_v50  ;;  %v3446_v2 = vld [vmem:[%s2412_s3 + $0x3b0] sm:$0xff] }
 0x139   : > { %v1552_v14 = vmul.f32 %v1408_v25, %v400_v63  ;;  %v1409_v51 = vadd.f32 1.0, %v2113_v53  ;;  %v984_v40 = vadd.f32 %v840_v47, %v3367_v45  ;;  %v841_v41 = vmul.f32 %v697_v13, %v3375_v39  ;;  %v3425_v63 = vld [vmem:[%s2412_s3 + $0x398] sm:$0xff] }
 0x13a   : > { %v2115_v59 = vpop.eup %2114  ;;  %1696 = vst [vmem:[%s2501_s16 + $0x320] sm:$0xff] %v1551_v36  ;;  %2122 = vtanh.f32 %v1126_v28  ;;  %v1127_v54 = vmul.f32 0.7978846, %v983_v60  ;;  %v842_v20 = vmul.f32 %v698_v10, %v3378_v16  ;;  %v404_v57 = vmul.f32 0.5, %v3324_v31 }
 0x13b   : > { %1697 = vst [vmem:[%s2501_s16 + $0x328] sm:$0xff] %v1552_v14  ;;  %v1553_v43 = vmul.f32 %v1409_v51, %v401_v56  ;;  %v1410_v37 = vadd.f32 1.0, %v2115_v59  ;;  %v1128_v19 = vmul.f32 0.7978846, %v984_v40  ;;  %v985_v5 = vadd.f32 %v841_v41, %v3375_v39  ;;  %v3459_v14 = vld [vmem:[%s2412_s3 + $0x3b8] sm:$0xff] }
 0x13c   : > { %2124 = vtanh.f32 %v1127_v54  ;;  %v986_v44 = vadd.f32 %v842_v20, %v3378_v16  ;;  %v699_v42 = vmul.f32 %v555_v29, %v3396_v50  ;;  %v556_v26 = vmul.f32 0.044715, %v3406_v0 }
 0x13d   : > { %v2117_v6 = vpop.eup %2116  ;;  %1698 = vst [vmem:[%s2501_s16 + $0x330] sm:$0xff] %v1553_v43  ;;  %v1554_v58 = vmul.f32 %v1410_v37, %v402_v9  ;;  %2126 = vtanh.f32 %v1128_v19  ;;  %v1129_v12 = vmul.f32 0.7978846, %v985_v5  ;;  %v405_v31 = vmul.f32 0.5, %v3338_v55 }
 0x13e   : > { %v2119_v38 = vpop.eup %2118  ;;  %v1411_v52 = vadd.f32 1.0, %v2117_v6  ;;  %v1130_v24 = vmul.f32 0.7978846, %v986_v44  ;;  %v843_v62 = vmul.f32 %v699_v42, %v3396_v50  ;;  %v700_v8 = vmul.f32 %v556_v26, %v3406_v0 }
 0x13f   : > { %1699 = vst.msk [vmem:[%s2501_s16 + $0x338] sm:$0xff] %vm1602_vm0, %v1554_v58  ;;  %v1412_v46 = vadd.f32 1.0, %v2119_v38  ;;  %2128 = vtanh.f32 %v1129_v12  ;;  %v557_v23 = vmul.f32 0.044715, %v3414_v33  ;;  %v406_v55 = vmul.f32 0.5, %v3355_v27 }
 0x140   : > { %v2121_v17 = vpop.eup %2120  ;;  %v1555_v49 = vmul.f32 %v1411_v52, %v403_v30  ;;  %2130 = vtanh.f32 %v1130_v24  ;;  %v987_v1 = vadd.f32 %v843_v62, %v3396_v50  ;;  %v844_v4 = vmul.f32 %v700_v8, %v3406_v0  ;;  %v3476_v24 = vld [vmem:[%s2412_s3 + $0x3c8] sm:$0xff] }
 0x141   : > { %v1556_v56 = vmul.f32 %v1412_v46, %v404_v57  ;;  %v1413_v61 = vadd.f32 1.0, %v2121_v17  ;;  %v701_v21 = vmul.f32 %v557_v23, %v3414_v33  ;;  %v407_v48 = vmul.f32 0.5, %v3361_v3 }
 0x142   : > { %1700 = vst [vmem:[%s2501_s16 + $0x340] sm:$0xff] %v1555_v49  ;;  %v408_v27 = vmul.f32 0.5, %v3367_v45  ;;  %v1131_v9 = vmul.f32 0.7978846, %v987_v1  ;;  %v558_v34 = vmul.f32 0.044715, %v3425_v63  ;;  %v988_v35 = vadd.f32 %v844_v4, %v3406_v0 }
 0x143   : > { %1701 = vst [vmem:[%s2501_s16 + $0x348] sm:$0xff] %v1556_v56  ;;  %v1557_v11 = vmul.f32 %v1413_v61, %v405_v31  ;;  %v845_v32 = vmul.f32 %v701_v21, %v3414_v33  ;;  %v559_v22 = vmul.f32 0.044715, %v3430_v7  ;;  %v409_v25 = vmul.f32 0.5, %v3375_v39  ;;  %v3473_v31 = vld [vmem:[%s2412_s3 + $0x3c0] sm:$0xff]  ;;  %v3483_v1 = vld [vmem:[%s2412_s3 + $0x3d0] sm:$0xff] }
 0x144   : > { %v2123_v15 = vpop.eup %2122  ;;  %2132 = vtanh.f32 %v1131_v9  ;;  %v702_v3 = vmul.f32 %v558_v34, %v3425_v63  ;;  %v560_v45 = vmul.f32 0.044715, %v3435_v18  ;;  %v1132_v13 = vmul.f32 0.7978846, %v988_v35  ;;  %v3497_v35 = vld [vmem:[%s2412_s3 + $0x3d8] sm:$0xff] }
 0x145   : > { %1702 = vst [vmem:[%s2501_s16 + $0x350] sm:$0xff] %v1557_v11  ;;  %v1414_v47 = vadd.f32 1.0, %v2123_v15  ;;  %v989_v10 = vadd.f32 %v845_v32, %v3414_v33  ;;  %v703_v53 = vmul.f32 %v559_v22, %v3430_v7  ;;  %v410_v30 = vmul.f32 0.5, %v3378_v16  ;;  %v3500_v32 = vld [vmem:[%s2412_s3 + $0x3e0] sm:$0xff] }
 0x146   : > { %v2125_v36 = vpop.eup %2124  ;;  %v846_v28 = vmul.f32 %v702_v3, %v3425_v63  ;;  %v704_v39 = vmul.f32 %v560_v45, %v3435_v18  ;;  %v561_v60 = vmul.f32 0.044715, %v3446_v2  ;;  %2134 = vtanh.f32 %v1132_v13 }
 0x147   : > { %v2127_v51 = vpop.eup %2126  ;;  %v1558_v40 = vmul.f32 %v1414_v47, %v406_v55  ;;  %v1415_v41 = vadd.f32 1.0, %v2125_v36  ;;  %v1133_v59 = vmul.f32 0.7978846, %v989_v10  ;;  %v847_v29 = vmul.f32 %v703_v53, %v3430_v7 }
 0x148   : > { %v1416_v54 = vadd.f32 1.0, %v2127_v51  ;;  %v990_v20 = vadd.f32 %v846_v28, %v3425_v63  ;;  %v848_v16 = vmul.f32 %v704_v39, %v3435_v18  ;;  %v705_v19 = vmul.f32 %v561_v60, %v3446_v2 }
 0x149   : > { %v2129_v43 = vpop.eup %2128  ;;  %1703 = vst [vmem:[%s2501_s16 + $0x358] sm:$0xff] %v1558_v40  ;;  %v1559_v37 = vmul.f32 %v1415_v41, %v407_v48  ;;  %2136 = vtanh.f32 %v1133_v59  ;;  %v562_v5 = vmul.f32 0.044715, %v3459_v14  ;;  %v991_v58 = vadd.f32 %v847_v29, %v3430_v7 }
 0x14a   : > { %v2131_v57 = vpop.eup %2130  ;;  %v1560_v44 = vmul.f32 %v1416_v54, %v408_v27  ;;  %v1417_v42 = vadd.f32 1.0, %v2129_v43  ;;  %v1134_v6 = vmul.f32 0.7978846, %v990_v20  ;;  %v992_v26 = vadd.f32 %v848_v16, %v3435_v18  ;;  %v3520_v54 = vld [vmem:[%s2412_s3 + $0x3f0] sm:$0xff] }
 0x14b   : > { %1704 = vst [vmem:[%s2501_s16 + $0x360] sm:$0xff] %v1559_v37  ;;  %v1418_v12 = vadd.f32 1.0, %v2131_v57  ;;  %v849_v38 = vmul.f32 %v705_v19, %v3446_v2  ;;  %v706_v52 = vmul.f32 %v562_v5, %v3459_v14  ;;  %v411_v46 = vmul.f32 0.5, %v3396_v50 }
 0x14c   : > { %1705 = vst [vmem:[%s2501_s16 + $0x368] sm:$0xff] %v1560_v44  ;;  %v1561_v62 = vmul.f32 %v1417_v42, %v409_v25  ;;  %2138 = vtanh.f32 %v1134_v6  ;;  %v1135_v8 = vmul.f32 0.7978846, %v991_v58  ;;  %v1136_v17 = vmul.f32 0.7978846, %v992_v26 }
 0x14d   : > { %v1562_v23 = vmul.f32 %v1418_v12, %v410_v30  ;;  %v993_v49 = vadd.f32 %v849_v38, %v3446_v2  ;;  %v850_v55 = vmul.f32 %v706_v52, %v3459_v14  ;;  %v412_v61 = vmul.f32 0.5, %v3406_v0  ;;  %v3511_v30 = vld [vmem:[%s2412_s3 + $0x3e8] sm:$0xff] }
 0x14e   : > { %v2133_v56 = vpop.eup %2132  ;;  %1706 = vst [vmem:[%s2501_s16 + $0x370] sm:$0xff] %v1561_v62  ;;  %2140 = vtanh.f32 %v1135_v8  ;;  %v563_v4 = vmul.f32 0.044715, %v3473_v31  ;;  %v564_v50 = vmul.f32 0.044715, %v3476_v24  ;;  %v413_v9 = vmul.f32 0.5, %v3414_v33 }
 0x14f   : > { %1707 = vst.msk [vmem:[%s2501_s16 + $0x378] sm:$0xff] %vm1602_vm0, %v1562_v23  ;;  %v1419_v21 = vadd.f32 1.0, %v2133_v56  ;;  %2142 = vtanh.f32 %v1136_v17  ;;  %v1137_v48 = vmul.f32 0.7978846, %v993_v49  ;;  %v994_v27 = vadd.f32 %v850_v55, %v3459_v14 }
 0x150   : > { %v707_v34 = vmul.f32 %v563_v4, %v3473_v31  ;;  %v708_v11 = vmul.f32 %v564_v50, %v3476_v24  ;;  %v565_v0 = vmul.f32 0.044715, %v3483_v1  ;;  %v2135_v22 = vpop.eup %2134  ;;  %v414_v25 = vmul.f32 0.5, %v3425_v63 }
 0x151   : > { %v1563_v15 = vmul.f32 %v1419_v21, %v411_v46  ;;  %2144 = vtanh.f32 %v1137_v48  ;;  %v1138_v3 = vmul.f32 0.7978846, %v994_v27  ;;  %v1420_v45 = vadd.f32 1.0, %v2135_v22 }
 0x152   : > { %v851_v33 = vmul.f32 %v707_v34, %v3473_v31  ;;  %v852_v47 = vmul.f32 %v708_v11, %v3476_v24  ;;  %v709_v13 = vmul.f32 %v565_v0, %v3483_v1  ;;  %v415_v53 = vmul.f32 0.5, %v3430_v7  ;;  %v3549_v0 = vld [vmem:[%s2412_s3 + $0x408] sm:$0xff] }
 0x153   : > { %v2137_v10 = vpop.eup %2136  ;;  %1708 = vst [vmem:[%s2501_s16 + $0x380] sm:$0xff] %v1563_v15  ;;  %2146 = vtanh.f32 %v1138_v3  ;;  %v566_v36 = vmul.f32 0.044715, %v3497_v35  ;;  %v567_v63 = vmul.f32 0.044715, %v3500_v32  ;;  %v1564_v28 = vmul.f32 %v1420_v45, %v412_v61  ;;  %v3541_v61 = vld [vmem:[%s2412_s3 + $0x400] sm:$0xff] }
 0x154   : > { %v1421_v39 = vadd.f32 1.0, %v2137_v10  ;;  %v995_v60 = vadd.f32 %v851_v33, %v3473_v31  ;;  %v996_v51 = vadd.f32 %v852_v47, %v3476_v24  ;;  %v416_v40 = vmul.f32 0.5, %v3435_v18  ;;  %v3556_v33 = vld [vmem:[%s2412_s3 + $0x410] sm:$0xff] }
 0x155   : > { %v853_v41 = vmul.f32 %v709_v13, %v3483_v1  ;;  %v710_v7 = vmul.f32 %v566_v36, %v3497_v35  ;;  %v711_v59 = vmul.f32 %v567_v63, %v3500_v32  ;;  %1709 = vst [vmem:[%s2501_s16 + $0x388] sm:$0xff] %v1564_v28  ;;  %v568_v37 = vmul.f32 0.044715, %v3511_v30  ;;  %v3563_v36 = vld [vmem:[%s2412_s3 + $0x418] sm:$0xff] }
 0x156   : > { %v2139_v20 = vpop.eup %2138  ;;  %v1565_v29 = vmul.f32 %v1421_v39, %v413_v9  ;;  %v1139_v16 = vmul.f32 0.7978846, %v995_v60  ;;  %v1140_v43 = vmul.f32 0.7978846, %v996_v51  ;;  %v417_v42 = vmul.f32 0.5, %v3446_v2  ;;  %v3535_v2 = vld [vmem:[%s2412_s3 + $0x3f8] sm:$0xff] }
 0x157   : > { %v1422_v19 = vadd.f32 1.0, %v2139_v20  ;;  %v997_v5 = vadd.f32 %v853_v41, %v3483_v1  ;;  %v854_v18 = vmul.f32 %v710_v7, %v3497_v35  ;;  %v855_v57 = vmul.f32 %v711_v59, %v3500_v32 }
 0x158   : > { %v2141_v44 = vpop.eup %2140  ;;  %1710 = vst [vmem:[%s2501_s16 + $0x390] sm:$0xff] %v1565_v29  ;;  %2148 = vtanh.f32 %v1139_v16  ;;  %v712_v6 = vmul.f32 %v568_v37, %v3511_v30  ;;  %v569_v58 = vmul.f32 0.044715, %v3520_v54  ;;  %v418_v55 = vmul.f32 0.5, %v3459_v14  ;;  %v3579_v37 = vld [vmem:[%s2412_s3 + $0x420] sm:$0xff] }
 0x159   : > { %v2143_v12 = vpop.eup %2142  ;;  %v1566_v26 = vmul.f32 %v1422_v19, %v414_v25  ;;  %v1423_v38 = vadd.f32 1.0, %v2141_v44  ;;  %2150 = vtanh.f32 %v1140_v43  ;;  %v1141_v52 = vmul.f32 0.7978846, %v997_v5 }
 0x15a   : > { %v1424_v62 = vadd.f32 1.0, %v2143_v12  ;;  %v998_v46 = vadd.f32 %v854_v18, %v3497_v35  ;;  %v999_v8 = vadd.f32 %v855_v57, %v3500_v32  ;;  %v856_v23 = vmul.f32 %v712_v6, %v3511_v30 }
 0x15b   : > { %v2145_v17 = vpop.eup %2144  ;;  %1711 = vst [vmem:[%s2501_s16 + $0x398] sm:$0xff] %v1566_v26  ;;  %v1567_v49 = vmul.f32 %v1423_v38, %v415_v53  ;;  %2152 = vtanh.f32 %v1141_v52  ;;  %v713_v56 = vmul.f32 %v569_v58, %v3520_v54  ;;  %v419_v9 = vmul.f32 0.5, %v3473_v31 }
 0x15c   : > { %v1568_v4 = vmul.f32 %v1424_v62, %v416_v40  ;;  %v1425_v50 = vadd.f32 1.0, %v2145_v17  ;;  %v1142_v21 = vmul.f32 0.7978846, %v998_v46  ;;  %v1143_v48 = vmul.f32 0.7978846, %v999_v8  ;;  %v3589_v62 = vld [vmem:[%s2412_s3 + $0x428] sm:$0xff] }
 0x15d   : > { %v2147_v27 = vpop.eup %2146  ;;  %1712 = vst [vmem:[%s2501_s16 + $0x3a0] sm:$0xff] %v1567_v49  ;;  %v1000_v34 = vadd.f32 %v856_v23, %v3511_v30  ;;  %v857_v11 = vmul.f32 %v713_v56, %v3520_v54  ;;  %v570_v14 = vmul.f32 0.044715, %v3535_v2  ;;  %v571_v25 = vmul.f32 0.044715, %v3541_v61 }
 0x15e   : > { %1713 = vst [vmem:[%s2501_s16 + $0x3a8] sm:$0xff] %v1568_v4  ;;  %v1569_v22 = vmul.f32 %v1425_v50, %v417_v42  ;;  %v1426_v15 = vadd.f32 1.0, %v2147_v27  ;;  %2154 = vtanh.f32 %v1142_v21  ;;  %v420_v13 = vmul.f32 0.5, %v3476_v24  ;;  %v3597_v50 = vld [vmem:[%s2412_s3 + $0x430] sm:$0xff]  ;;  %v3603_v27 = vld [vmem:[%s2412_s3 + $0x438] sm:$0xff] }
 0x15f   : > { %2156 = vtanh.f32 %v1143_v48  ;;  %v1144_v3 = vmul.f32 0.7978846, %v1000_v34  ;;  %v1001_v31 = vadd.f32 %v857_v11, %v3520_v54  ;;  %v714_v45 = vmul.f32 %v570_v14, %v3535_v2 }
 0x160   : > { %1714 = vst [vmem:[%s2501_s16 + $0x3b0] sm:$0xff] %v1569_v22  ;;  %v1570_v47 = vmul.f32 %v1426_v15, %v418_v55  ;;  %v715_v10 = vmul.f32 %v571_v25, %v3541_v61  ;;  %v572_v53 = vmul.f32 0.044715, %v3549_v0  ;;  %v421_v63 = vmul.f32 0.5, %v3483_v1 }
 0x161   : > { %2158 = vtanh.f32 %v1144_v3  ;;  %v1145_v28 = vmul.f32 0.7978846, %v1001_v31  ;;  %v858_v39 = vmul.f32 %v714_v45, %v3535_v2  ;;  %v422_v51 = vmul.f32 0.5, %v3497_v35 }
 0x162   : > { %v2149_v60 = vpop.eup %2148  ;;  %1715 = vst.msk [vmem:[%s2501_s16 + $0x3b8] sm:$0xff] %vm1602_vm0, %v1570_v47  ;;  %v859_v24 = vmul.f32 %v715_v10, %v3541_v61  ;;  %v716_v40 = vmul.f32 %v572_v53, %v3549_v0  ;;  %v573_v41 = vmul.f32 0.044715, %v3556_v33  ;;  %v574_v20 = vmul.f32 0.044715, %v3563_v36 }
 0x163   : > { %v2151_v7 = vpop.eup %2150  ;;  %v1427_v59 = vadd.f32 1.0, %v2149_v60  ;;  %2160 = vtanh.f32 %v1145_v28  ;;  %v1002_v1 = vadd.f32 %v858_v39, %v3535_v2  ;;  %v423_v18 = vmul.f32 0.5, %v3500_v32  ;;  %v3617_v28 = vld [vmem:[%s2412_s3 + $0x448] sm:$0xff] }
 0x164   : > { %v1428_v29 = vadd.f32 1.0, %v2151_v7  ;;  %v1003_v16 = vadd.f32 %v859_v24, %v3541_v61  ;;  %v860_v43 = vmul.f32 %v716_v40, %v3549_v0  ;;  %v717_v35 = vmul.f32 %v573_v41, %v3556_v33 }
 0x165   : > { %v2153_v19 = vpop.eup %2152  ;;  %v1571_v5 = vmul.f32 %v1427_v59, %v419_v9  ;;  %v1146_v57 = vmul.f32 0.7978846, %v1002_v1  ;;  %v718_v44 = vmul.f32 %v574_v20, %v3563_v36  ;;  %v575_v52 = vmul.f32 0.044715, %v3579_v37 }
 0x166   : > { %v1572_v42 = vmul.f32 %v1428_v29, %v420_v13  ;;  %v1429_v6 = vadd.f32 1.0, %v2153_v19  ;;  %v1147_v58 = vmul.f32 0.7978846, %v1003_v16  ;;  %v1004_v12 = vadd.f32 %v860_v43, %v3549_v0  ;;  %v3612_v13 = vld [vmem:[%s2412_s3 + $0x440] sm:$0xff]  ;;  %v3630_v16 = vld [vmem:[%s2412_s3 + $0x450] sm:$0xff] }
 0x167   : > { %1716 = vst [vmem:[%s2501_s16 + $0x3c0] sm:$0xff] %v1571_v5  ;;  %2162 = vtanh.f32 %v1146_v57  ;;  %v861_v26 = vmul.f32 %v717_v35, %v3556_v33  ;;  %v862_v38 = vmul.f32 %v718_v44, %v3563_v36  ;;  %v424_v8 = vmul.f32 0.5, %v3511_v30 }
 0x168   : > { %v2155_v32 = vpop.eup %2154  ;;  %1717 = vst [vmem:[%s2501_s16 + $0x3c8] sm:$0xff] %v1572_v42  ;;  %v1573_v46 = vmul.f32 %v1429_v6, %v421_v63  ;;  %2164 = vtanh.f32 %v1147_v58  ;;  %v1148_v23 = vmul.f32 0.7978846, %v1004_v12  ;;  %v719_v4 = vmul.f32 %v575_v52, %v3579_v37 }
 0x169   : > { %v2157_v17 = vpop.eup %2156  ;;  %v1430_v49 = vadd.f32 1.0, %v2155_v32  ;;  %v1005_v55 = vadd.f32 %v861_v26, %v3556_v33  ;;  %v1006_v56 = vadd.f32 %v862_v38, %v3563_v36  ;;  %v425_v48 = vmul.f32 0.5, %v3520_v54  ;;  %v3641_v26 = vld [vmem:[%s2412_s3 + $0x458] sm:$0xff] }
 0x16a   : > { %1718 = vst [vmem:[%s2501_s16 + $0x3d0] sm:$0xff] %v1573_v46  ;;  %v1431_v21 = vadd.f32 1.0, %v2157_v17  ;;  %2166 = vtanh.f32 %v1148_v23  ;;  %v576_v30 = vmul.f32 0.044715, %v3589_v62  ;;  %v863_v22 = vmul.f32 %v719_v4, %v3579_v37 }
 0x16b   : > { %v2159_v9 = vpop.eup %2158  ;;  %v1574_v34 = vmul.f32 %v1430_v49, %v422_v51  ;;  %v1149_v11 = vmul.f32 0.7978846, %v1005_v55  ;;  %v1150_v14 = vmul.f32 0.7978846, %v1006_v56  ;;  %v577_v54 = vmul.f32 0.044715, %v3597_v50 }
 0x16c   : > { %v1575_v15 = vmul.f32 %v1431_v21, %v423_v18  ;;  %v1432_v25 = vadd.f32 1.0, %v2159_v9  ;;  %v720_v3 = vmul.f32 %v576_v30, %v3589_v62  ;;  %v1007_v45 = vadd.f32 %v863_v22, %v3579_v37  ;;  %v3650_v55 = vld [vmem:[%s2412_s3 + $0x460] sm:$0xff] }
 0x16d   : > { %v2161_v31 = vpop.eup %2160  ;;  %1719 = vst [vmem:[%s2501_s16 + $0x3d8] sm:$0xff] %v1574_v34  ;;  %2168 = vtanh.f32 %v1149_v11  ;;  %v578_v47 = vmul.f32 0.044715, %v3603_v27  ;;  %v426_v39 = vmul.f32 0.5, %v3535_v2  ;;  %v721_v51 = vmul.f32 %v577_v54, %v3597_v50 }
 0x16e   : > { %1720 = vst [vmem:[%s2501_s16 + $0x3e0] sm:$0xff] %v1575_v15  ;;  %v1576_v10 = vmul.f32 %v1432_v25, %v424_v8  ;;  %v1433_v53 = vadd.f32 1.0, %v2161_v31  ;;  %2170 = vtanh.f32 %v1150_v14  ;;  %v864_v63 = vmul.f32 %v720_v3, %v3589_v62  ;;  %v3661_v15 = vld [vmem:[%s2412_s3 + $0x468] sm:$0xff]  ;;  %v3665_v31 = vld [vmem:[%s2412_s3 + $0x470] sm:$0xff] }
 0x16f   : > { %v1151_v60 = vmul.f32 0.7978846, %v1007_v45  ;;  %v722_v24 = vmul.f32 %v578_v47, %v3603_v27  ;;  %v427_v41 = vmul.f32 0.5, %v3541_v61  ;;  %v579_v59 = vmul.f32 0.044715, %v3612_v13 }
 0x170   : > { %1721 = vst [vmem:[%s2501_s16 + $0x3e8] sm:$0xff] %v1576_v10  ;;  %v1577_v40 = vmul.f32 %v1433_v53, %v425_v48  ;;  %v1008_v7 = vadd.f32 %v864_v63, %v3589_v62  ;;  %v865_v20 = vmul.f32 %v721_v51, %v3597_v50  ;;  %v580_v29 = vmul.f32 0.044715, %v3617_v28 }
 0x171   : > { %v2163_v1 = vpop.eup %2162  ;;  %2172 = vtanh.f32 %v1151_v60  ;;  %v866_v2 = vmul.f32 %v722_v24, %v3603_v27  ;;  %v428_v61 = vmul.f32 0.5, %v3549_v0  ;;  %v723_v5 = vmul.f32 %v579_v59, %v3612_v13 }
 0x172   : > { %v2165_v43 = vpop.eup %2164  ;;  %1722 = vst [vmem:[%s2501_s16 + $0x3f0] sm:$0xff] %v1577_v40  ;;  %v1434_v35 = vadd.f32 1.0, %v2163_v1  ;;  %v1152_v19 = vmul.f32 0.7978846, %v1008_v7  ;;  %v1009_v57 = vadd.f32 %v865_v20, %v3597_v50  ;;  %v724_v42 = vmul.f32 %v580_v29, %v3617_v28 }
 0x173   : > { %v1435_v18 = vadd.f32 1.0, %v2165_v43  ;;  %v1010_v44 = vadd.f32 %v866_v2, %v3603_v27  ;;  %v867_v12 = vmul.f32 %v723_v5, %v3612_v13  ;;  %v581_v0 = vmul.f32 0.044715, %v3630_v16 }
 0x174   : > { %v2167_v6 = vpop.eup %2166  ;;  %v1578_v58 = vmul.f32 %v1434_v35, %v426_v39  ;;  %2174 = vtanh.f32 %v1152_v19  ;;  %v1153_v32 = vmul.f32 0.7978846, %v1009_v57  ;;  %v429_v8 = vmul.f32 0.5, %v3556_v33  ;;  %v3671_v39 = vld [vmem:[%s2412_s3 + $0x478] sm:$0xff] }
 0x175   : > { %v1579_v38 = vmul.f32 %v1435_v18, %v427_v41  ;;  %v1436_v52 = vadd.f32 1.0, %v2167_v6  ;;  %v1154_v46 = vmul.f32 0.7978846, %v1010_v44  ;;  %v1011_v23 = vadd.f32 %v867_v12, %v3612_v13 }
 0x176   : > { %1723 = vst.msk [vmem:[%s2501_s16 + $0x3f8] sm:$0xff] %vm1602_vm0, %v1578_v58  ;;  %v868_v17 = vmul.f32 %v724_v42, %v3617_v28  ;;  %v725_v49 = vmul.f32 %v581_v0, %v3630_v16  ;;  %v430_v21 = vmul.f32 0.5, %v3563_v36  ;;  %2176 = vtanh.f32 %v1153_v32 }
 0x177   : > { %v2169_v56 = vpop.eup %2168  ;;  %1724 = vst [vmem:[%s2501_s16 + $0x400] sm:$0xff] %v1579_v38  ;;  %v1580_v4 = vmul.f32 %v1436_v52, %v428_v61  ;;  %v582_v48 = vmul.f32 0.044715, %v3641_v26  ;;  %2178 = vtanh.f32 %v1154_v46  ;;  %v1155_v9 = vmul.f32 0.7978846, %v1011_v23 }
 0x178   : > { %v2171_v33 = vpop.eup %2170  ;;  %v1437_v30 = vadd.f32 1.0, %v2169_v56  ;;  %v1012_v34 = vadd.f32 %v868_v17, %v3617_v28  ;;  %v869_v14 = vmul.f32 %v725_v49, %v3630_v16  ;;  %v583_v36 = vmul.f32 0.044715, %v3650_v55 }
 0x179   : > { %1725 = vst [vmem:[%s2501_s16 + $0x408] sm:$0xff] %v1580_v4  ;;  %v1438_v11 = vadd.f32 1.0, %v2171_v33  ;;  %v726_v22 = vmul.f32 %v582_v48, %v3641_v26  ;;  %v431_v3 = vmul.f32 0.5, %v3579_v37  ;;  %2180 = vtanh.f32 %v1155_v9 }
 0x17a   : > { %v1581_v25 = vmul.f32 %v1437_v30, %v429_v8  ;;  %v1156_v54 = vmul.f32 0.7978846, %v1012_v34  ;;  %v1013_v10 = vadd.f32 %v869_v14, %v3630_v16  ;;  %v727_v63 = vmul.f32 %v583_v36, %v3650_v55 }
 0x17b   : > { %v2173_v45 = vpop.eup %2172  ;;  %v1582_v47 = vmul.f32 %v1438_v11, %v430_v21  ;;  %v870_v53 = vmul.f32 %v726_v22, %v3641_v26  ;;  %v432_v51 = vmul.f32 0.5, %v3589_v62  ;;  %v584_v37 = vmul.f32 0.044715, %v3661_v15 }
 0x17c   : > { %1726 = vst [vmem:[%s2501_s16 + $0x410] sm:$0xff] %v1581_v25  ;;  %v1439_v60 = vadd.f32 1.0, %v2173_v45  ;;  %2182 = vtanh.f32 %v1156_v54  ;;  %v1157_v24 = vmul.f32 0.7978846, %v1013_v10  ;;  %v871_v41 = vmul.f32 %v727_v63, %v3650_v55 }
 0x17d   : > { %1727 = vst [vmem:[%s2501_s16 + $0x418] sm:$0xff] %v1582_v47  ;;  %v1014_v40 = vadd.f32 %v870_v53, %v3641_v26  ;;  %v585_v7 = vmul.f32 0.044715, %v3665_v31  ;;  %v728_v20 = vmul.f32 %v584_v37, %v3661_v15  ;;  %v586_v2 = vmul.f32 0.044715, %v3671_v39 }
 0x17e   : > { %v2175_v59 = vpop.eup %2174  ;;  %v1583_v1 = vmul.f32 %v1439_v60, %v431_v3  ;;  %2184 = vtanh.f32 %v1157_v24  ;;  %v1015_v43 = vadd.f32 %v871_v41, %v3650_v55  ;;  %v433_v35 = vmul.f32 0.5, %v3597_v50 }
 0x17f   : > { %v1440_v29 = vadd.f32 1.0, %v2175_v59  ;;  %v1158_v62 = vmul.f32 0.7978846, %v1014_v40  ;;  %v872_v61 = vmul.f32 %v728_v20, %v3661_v15  ;;  %v729_v19 = vmul.f32 %v585_v7, %v3665_v31 }
 0x180   : > { %1728 = vst [vmem:[%s2501_s16 + $0x420] sm:$0xff] %v1583_v1  ;;  %v730_v5 = vmul.f32 %v586_v2, %v3671_v39  ;;  %v2177_v18 = vpop.eup %2176  ;;  %v434_v44 = vmul.f32 0.5, %v3603_v27  ;;  %v1159_v42 = vmul.f32 0.7978846, %v1015_v43  ;;  %v435_v52 = vmul.f32 0.5, %v3612_v13 }
 0x181   : > { %v1584_v57 = vmul.f32 %v1440_v29, %v432_v51  ;;  %2186 = vtanh.f32 %v1158_v62  ;;  %v2179_v6 = vpop.eup %2178  ;;  %v1441_v58 = vadd.f32 1.0, %v2177_v18  ;;  %v1016_v12 = vadd.f32 %v872_v61, %v3661_v15 }
 0x182   : > { %v873_v0 = vmul.f32 %v729_v19, %v3665_v31  ;;  %v874_v50 = vmul.f32 %v730_v5, %v3671_v39  ;;  %v1442_v38 = vadd.f32 1.0, %v2179_v6  ;;  %2188 = vtanh.f32 %v1159_v42 }
 0x183   : > { %1729 = vst [vmem:[%s2501_s16 + $0x428] sm:$0xff] %v1584_v57  ;;  %v2181_v32 = vpop.eup %2180  ;;  %v1585_v46 = vmul.f32 %v1441_v58, %v433_v35  ;;  %v1160_v27 = vmul.f32 0.7978846, %v1016_v12  ;;  %v436_v56 = vmul.f32 0.5, %v3617_v28  ;;  %v437_v30 = vmul.f32 0.5, %v3630_v16 }
 0x184   : > { %v1017_v8 = vadd.f32 %v873_v0, %v3665_v31  ;;  %v1018_v23 = vadd.f32 %v874_v50, %v3671_v39  ;;  %v1586_v17 = vmul.f32 %v1442_v38, %v434_v44  ;;  %v1443_v49 = vadd.f32 1.0, %v2181_v32 }
 0x185   : > { %1730 = vst [vmem:[%s2501_s16 + $0x430] sm:$0xff] %v1585_v46  ;;  %2190 = vtanh.f32 %v1160_v27  ;;  %v438_v11 = vmul.f32 0.5, %v3641_v26  ;;  %v439_v25 = vmul.f32 0.5, %v3650_v55  ;;  %v440_v45 = vmul.f32 0.5, %v3661_v15 }
 0x186   : > { %v2183_v4 = vpop.eup %2182  ;;  %v1161_v21 = vmul.f32 0.7978846, %v1017_v8  ;;  %v1162_v48 = vmul.f32 0.7978846, %v1018_v23  ;;  %1731 = vst.msk [vmem:[%s2501_s16 + $0x438] sm:$0xff] %vm1602_vm0, %v1586_v17  ;;  %v1587_v13 = vmul.f32 %v1443_v49, %v435_v52  ;;  %v441_v53 = vmul.f32 0.5, %v3665_v31 }
 0x187   : > { %v1444_v33 = vadd.f32 1.0, %v2183_v4  ;;  %v442_v55 = vmul.f32 0.5, %v3671_v39 }
 0x188   : > { %2192 = vtanh.f32 %v1161_v21  ;;  %v2185_v9 = vpop.eup %2184  ;;  %1732 = vst [vmem:[%s2501_s16 + $0x440] sm:$0xff] %v1587_v13 }
 0x189   : > { %v1588_v34 = vmul.f32 %v1444_v33, %v436_v56  ;;  %2194 = vtanh.f32 %v1162_v48  ;;  %v1445_v28 = vadd.f32 1.0, %v2185_v9 }
 0x18b   : > { %v2187_v14 = vpop.eup %2186  ;;  %1733 = vst [vmem:[%s2501_s16 + $0x448] sm:$0xff] %v1588_v34  ;;  %v1589_v22 = vmul.f32 %v1445_v28, %v437_v30 }
 0x18c   : > { %v1446_v36 = vadd.f32 1.0, %v2187_v14  ;;  %v2189_v3 = vpop.eup %2188 }
 0x18d   : > { %1734 = vst [vmem:[%s2501_s16 + $0x450] sm:$0xff] %v1589_v22  ;;  %v1447_v54 = vadd.f32 1.0, %v2189_v3 }
 0x18e   : > { %v1590_v16 = vmul.f32 %v1446_v36, %v438_v11 }
 0x18f   : > { %v2191_v47 = vpop.eup %2190  ;;  %v1591_v26 = vmul.f32 %v1447_v54, %v439_v25 }
 0x190   : > { %1735 = vst [vmem:[%s2501_s16 + $0x458] sm:$0xff] %v1590_v16  ;;  %v1448_v10 = vadd.f32 1.0, %v2191_v47 }
 0x191   : > { %1736 = vst [vmem:[%s2501_s16 + $0x460] sm:$0xff] %v1591_v26 }
 0x192   : > { %v2193_v63 = vpop.eup %2192  ;;  %v1592_v51 = vmul.f32 %v1448_v10, %v440_v45  ;;  %1747 = sbr.rel (!%p2352_p9) target bundleno = 437 (0x1b5), region = 32 }
 0x193   : > { %v2195_v60 = vpop.eup %2194  ;;  %v1449_v37 = vadd.f32 1.0, %v2193_v63 }
 0x194   : > { %v1450_v24 = vadd.f32 1.0, %v2195_v60  ;;  %1737 = vst [vmem:[%s2501_s16 + $0x468] sm:$0xff] %v1592_v51 }
 0x195   : > { %v1593_v40 = vmul.f32 %v1449_v37, %v441_v53 }
 0x196   : > { %v1594_v15 = vmul.f32 %v1450_v24, %v442_v55 }
 0x197   : > { %1738 = vst [vmem:[%s2501_s16 + $0x470] sm:$0xff] %v1593_v40 }
 0x198   : > { %1739 = vst.msk [vmem:[%s2501_s16 + $0x478] sm:$0xff] %vm1602_vm0, %v1594_v15 }
 0x199   : > { %s3790_s28 = smov (!%p1750_p6, %s1749_s28), 18 }
 0x19a   : > { %s3719_s2 = sshll.u32 %s3790_s28, 10 }
 0x19b   : > { %s1755_s4 = ssub.s32 18432, %s3719_s2 }
 0x19c   : > { %1756 = vsyncadd %s1741_s23, %s1755_s4  ;;  %p1848_p10 = scmp.ne.s32.totalorder %s3719_s2, 0  ;;  %s1862_s17 = smul.u32 18432, %s2329_s10 }
 0x19d   : > { %s1762_s5 = sshll.u32 %s2501_s16, 4  ;;  %s2295_s20 = smov [#allocation5]   ;;  %s3732_s5 = int_to_ptr.vmem [resolvable:$true] %s1762_s5 }
 0x19e   : > { %s3730_s14 = scalar_lea.hbm %s3778_s1, %s1862_s17  ;;  %s2224_s19 = scalar_lea.vmem %s3732_s5, %s3719_s2 }
 0x19f   : > { %p2225_p9 = scmp.ne.s32.totalorder %s3732_s5, %s2224_s19  ;;  %s2228_s21 = sshll.u32 %s2295_s20, 4  ;;  %s2229_s21 = int_to_ptr.vmem [resolvable:$false] %s2228_s21 }
 0x1a0   : > { %s2230_s10 = scalar_lea.vmem %s2229_s21, 36864  ;;  %p2231_p12 = scmp.lt.s32.totalorder %s3732_s5, %s2229_s21 }
 0x1a1   : > { %p2226_p13 = pnand %p2225_p9, %p1848_p10  ;;  %p2232_p0 = scmp.lt.s32.totalorder %s2230_s10, %s2224_s19 }
 0x1a3   : > { %p2227_p11 = pneg %p2226_p13  ;;  %p2233_p1 = por %p2232_p0, %p2231_p12 }
 0x1a5   : > { %p2234_p3 = pnand %p2233_p1, %p2227_p11 }
 0x1a7   : > { %2237 = shalt.err (!%p2234_p3)
}
 0x1a8   : > { %s2238_s22 = scalar_lea.hbm %s3730_s14, %s3719_s2  ;;  %s2242_s29 = scalar_lea.hbm %s3778_s1, 76800 }
 0x1a9   : > { %p2239_p4 = scmp.ne.s32.totalorder %s3730_s14, %s2238_s22  ;;  %p2243_p7 = scmp.lt.u32.totalorder %s3730_s14, %s3778_s1 }
 0x1aa   : > { %p2244_p8 = scmp.lt.u32.totalorder %s2242_s29, %s2238_s22  ;;  %p2246_p9 = scmp.lt.u32.totalorder %s2238_s22, %s3730_s14 }
 0x1ab   : > { %p2240_p5 = pnand %p2239_p4, %p1848_p10 }
 0x1ac   : > { %p2245_p6 = por %p2244_p8, %p2243_p7 }
 0x1ad   : > { %p2241_p2 = pneg %p2240_p5 }
 0x1ae   : > { %p2247_p13 = por %p2246_p9, %p2245_p6 }
 0x1b0   : > { %p2248_p11 = pnand %p2247_p13, %p2241_p2 }
 0x1b2   : > { %2251 = shalt.err (!%p2248_p11)
}
 0x1b3   : > { %s2296_s16 = smov 1024   ;;  %s2297_s25 = smov 64  }
 0x1b4   : > { %1768 = dma.vmem_to_hbm [thread:$0]  (%p1848_p10), %s3732_s5, %s3719_s2, %s3730_s14, %s1741_s23, %s2296_s16, %s2296_s16, %s2297_s25  }
 0x1b5 PF: > { %p1871_p12 = scmp.ge.s32.totalorder %s2290_s9, 2  ;;  %s1777_s28 = sand.u32 1, %s2278_s6  }
 0x1b6   : > { %p3782_p0 = scmp.ne.s32.totalorder %s3781_s18, 0  ;;  %s1778_s4 = scalar_lea.sflag [#allocation4], %s1777_s28 }
 0x1b8   : > { %p1868_p1 = pnand %p1871_p12, %p3782_p0 }
 0x1ba   : > { %2273 = dma.done.wait (!%p1868_p1), %s1778_s4, 18432  }
 0x1bb   : > { %2275 = vsyncadd (!%p1868_p1), %s1778_s4, 4294948864  ;;  %p14_p3 = scmp.ge.s32.totalorder %s2333_s12, 7   ;;  %s3783_s6 = smov %s2282_s7 }
 0x1bc   : > { %s3784_s7 = smov %s2286_s8  ;;  %s3785_s8 = smov %s2345_s15 }
 0x1bd   : > { %s3786_s9 = smov %s2333_s12  ;;  %16 = sbr.rel (!%p14_p3) target bundleno = 5 (0x5), region = 69 }
 0x1c4   :  { %1783 = vsyncpa [#allocation3], 1 }
 0x1c5   :  { %1785 = vsyncpa [#allocation3 + $0x1], 1 }
 0x1c6   :  { %1786 = vsyncpa [#allocation4], 1 }
 0x1c7   :  { %1788 = vsyncpa [#allocation4 + $0x1], 1 }

</bundles_post_ra>
